<compile_context>
chip_gen: v7x
topology: tpu7x:2x2x1
jax: 0.10.0
libtpu: 0.0.40
codegen_flags: <defaults>
</compile_context>

<pallas_src>
import jax
import jax.numpy as jnp
from jax.experimental import pallas as pl
from jax.experimental.pallas import tpu as pltpu

# ----------------------------- mini config ---------------------------------
VOCAB      = 100
MAX_SEQ    = 16
HIDDEN     = 32          # "deberta.config.hidden_size" (synthetic)
N_HEADS    = 2
HEAD_DIM   = HIDDEN // N_HEADS
INTER      = 64
N_LAYERS   = 2
DENSE1_DIM = 512
NUM_LABELS = 3
LOGITS_PAD = 128         # lane-dense logits block; real labels in [:, :NUM_LABELS]
LN_EPS     = 1e-7
MASK_NEG   = -1e9        # additive bias for masked keys


# ----------------------------- kernel helpers -------------------------------
def _layer_norm(x, g, b):
    mean = jnp.mean(x, axis=-1, keepdims=True)
    var = jnp.mean((x - mean) ** 2, axis=-1, keepdims=True)
    return (x - mean) * jax.lax.rsqrt(var + LN_EPS) * g + b


# ----------------------------- fused Pallas kernel --------------------------
def _build_fused_kernel(B, S):
    BS = B * S

    def kernel(ids_ref, mask_ref, word_emb_ref, pos_emb_ref,
               emb_g_ref, emb_b_ref,
               wq_ref, bq_ref, wk_ref, bk_ref, wv_ref, bv_ref,
               wo_ref, bo_ref, ln1g_ref, ln1b_ref,
               w1_ref, b1_ref, w2_ref, b2_ref, ln2g_ref, ln2b_ref,
               hw1_ref, hb1_ref, hw2_ref, hb2_ref,
               out_ref):
        # ---- embedding gather in-kernel (one-hot matmul on the MXU) --------
        ids = ids_ref[...]                                            # (BS,1) i32
        vocab_iota = jax.lax.broadcasted_iota(jnp.int32, (BS, VOCAB), 1)
        onehot = (vocab_iota == ids).astype(jnp.float32)              # (BS,VOCAB)
        tok = jnp.dot(onehot, word_emb_ref[...],
                      preferred_element_type=jnp.float32)             # (BS,H)
        x = (tok.reshape(B, S, HIDDEN)
             + pos_emb_ref[0:S, :][None, :, :]).reshape(BS, HIDDEN)
        x = _layer_norm(x, emb_g_ref[...], emb_b_ref[...])            # (BS,H) f32

        # ---- additive attention-mask bias, built in-kernel ------------------
        bias = (1.0 - mask_ref[...].astype(jnp.float32)) * MASK_NEG   # (B,1,S)

        # ---- encoder layers (static loop over stacked weights) --------------
        for l in range(N_LAYERS):
            # hoist per-layer weight reads once
            wq_l, wk_l, wv_l = wq_ref[l], wk_ref[l], wv_ref[l]        # (NH,H,HD) bf16
            bq_l, bk_l, bv_l = bq_ref[l], bk_ref[l], bv_ref[l]        # (NH,1,HD) f32
            wo_l, bo_l = wo_ref[l], bo_ref[l]                         # (H,H) bf16 / (1,H)

            x16 = x.astype(jnp.bfloat16)
            attn = bo_l                                               # (1,H) f32
            for h in range(N_HEADS):
                # per-head projections: every result starts at lane 0 (no
                # lane slicing of a fused QKV block).  1/sqrt(HD) scale is
                # pre-folded into wq/bq at init time.
                qh = (jnp.dot(x16, wq_l[h], preferred_element_type=jnp.float32)
                      + bq_l[h]).reshape(B, S, HEAD_DIM)
                kh = (jnp.dot(x16, wk_l[h], preferred_element_type=jnp.float32)
                      + bk_l[h]).reshape(B, S, HEAD_DIM)
                vh = (jnp.dot(x16, wv_l[h], preferred_element_type=jnp.float32)
                      + bv_l[h]).reshape(B, S, HEAD_DIM)

                s = jnp.einsum('bqd,bkd->bqk',
                               qh.astype(jnp.bfloat16), kh.astype(jnp.bfloat16),
                               preferred_element_type=jnp.float32) + bias  # (B,S,S)
                # no max-subtraction: scores are tiny, masked keys are -1e9
                # (exp underflows cleanly to 0 in f32).
                p = jnp.exp(s)
                p = p * pl.reciprocal(jnp.sum(p, axis=-1, keepdims=True),
                                      approx=True)
                ctx = jnp.einsum('bqk,bkd->bqd',
                                 p.astype(jnp.bfloat16), vh.astype(jnp.bfloat16),
                                 preferred_element_type=jnp.float32)  # (B,S,HD)
                # per-head output projection against a sublane slice of W_o
                # (avoids a lane-axis concat of the heads).
                attn = attn + jnp.dot(
                    ctx.reshape(BS, HEAD_DIM).astype(jnp.bfloat16),
                    wo_l[h * HEAD_DIM:(h + 1) * HEAD_DIM, :],
                    preferred_element_type=jnp.float32)

            x = _layer_norm(x + attn, ln1g_ref[l], ln1b_ref[l])

            x16 = x.astype(jnp.bfloat16)
            ff = jnp.dot(x16, w1_ref[l],
                         preferred_element_type=jnp.float32) + b1_ref[l]
            ff = jax.nn.gelu(ff)                                      # tanh approx (EUP)
            ff = jnp.dot(ff.astype(jnp.bfloat16), w2_ref[l],
                         preferred_element_type=jnp.float32) + b2_ref[l]
            x = _layer_norm(x + ff, ln2g_ref[l], ln2b_ref[l])

        # ---- classification head on the full slab ---------------------------
        # Running dense1/ReLU/dense2 on all B*S rows keeps the stores
        # sublane/lane dense; the wrapper picks the CLS rows afterwards.
        xb = x.astype(jnp.bfloat16)
        h1 = jnp.dot(xb, hw1_ref[...],
                     preferred_element_type=jnp.float32) + hb1_ref[...]
        h1 = jnp.maximum(h1, 0.0)                                     # ReLU
        # dropout(p=0.1) is identity in eval mode
        out_ref[...] = jnp.dot(h1.astype(jnp.bfloat16), hw2_ref[...],
                               preferred_element_type=jnp.float32) + hb2_ref[...]

    return kernel


# ----------------------------- parameters -----------------------------------
def init_params(key):
    def nrm(k, shape, dtype=jnp.float32):
        return (jax.random.normal(k, shape, jnp.float32) * 0.02).astype(dtype)

    scale = 1.0 / (HEAD_DIM ** 0.5)
    keys = iter(jax.random.split(key, 16))
    params = {
        "word_emb": nrm(next(keys), (VOCAB, HIDDEN)),
        "pos_emb":  nrm(next(keys), (MAX_SEQ, HIDDEN)),
        "emb_ln_g": jnp.ones((1, HIDDEN), jnp.float32),
        "emb_ln_b": jnp.zeros((1, HIDDEN), jnp.float32),
        "layers": {
            # per-head Q/K/V weights; 1/sqrt(HEAD_DIM) folded into Q proj.
            "wq": (nrm(next(keys), (N_LAYERS, N_HEADS, HIDDEN, HEAD_DIM))
                   * scale).astype(jnp.bfloat16),
            "bq": jnp.zeros((N_LAYERS, N_HEADS, 1, HEAD_DIM), jnp.float32),
            "wk": nrm(next(keys), (N_LAYERS, N_HEADS, HIDDEN, HEAD_DIM), jnp.bfloat16),
            "bk": jnp.zeros((N_LAYERS, N_HEADS, 1, HEAD_DIM), jnp.float32),
            "wv": nrm(next(keys), (N_LAYERS, N_HEADS, HIDDEN, HEAD_DIM), jnp.bfloat16),
            "bv": jnp.zeros((N_LAYERS, N_HEADS, 1, HEAD_DIM), jnp.float32),
            "wo": nrm(next(keys), (N_LAYERS, HIDDEN, HIDDEN), jnp.bfloat16),
            "bo": jnp.zeros((N_LAYERS, 1, HIDDEN), jnp.float32),
            "ln1_g": jnp.ones((N_LAYERS, 1, HIDDEN), jnp.float32),
            "ln1_b": jnp.zeros((N_LAYERS, 1, HIDDEN), jnp.float32),
            "w1": nrm(next(keys), (N_LAYERS, HIDDEN, INTER), jnp.bfloat16),
            "b1": jnp.zeros((N_LAYERS, 1, INTER), jnp.float32),
            "w2": nrm(next(keys), (N_LAYERS, INTER, HIDDEN), jnp.bfloat16),
            "b2": jnp.zeros((N_LAYERS, 1, HIDDEN), jnp.float32),
            "ln2_g": jnp.ones((N_LAYERS, 1, HIDDEN), jnp.float32),
            "ln2_b": jnp.zeros((N_LAYERS, 1, HIDDEN), jnp.float32),
        },
    }
    hw2 = nrm(next(keys), (DENSE1_DIM, NUM_LABELS))
    params["head"] = {
        "w1": nrm(next(keys), (HIDDEN, DENSE1_DIM), jnp.bfloat16),
        "b1": jnp.zeros((1, DENSE1_DIM), jnp.float32),
        # pad the 3-wide final projection to a lane-dense 128-wide block
        "w2_pad": jnp.pad(hw2, ((0, 0), (0, LOGITS_PAD - NUM_LABELS))
                          ).astype(jnp.bfloat16),
        "b2_pad": jnp.zeros((1, LOGITS_PAD), jnp.float32),
    }
    return params


# ----------------------------- forward ---------------------------------------
def deberta_with_dense_forward(params, input_ids, attention_mask, labels=None):
    B, S = input_ids.shape
    BS = B * S
    # only metadata reshapes here — all compute happens inside the kernel
    ids = input_ids.reshape(BS, 1).astype(jnp.int32)
    mask = attention_mask.reshape(B, 1, S).astype(jnp.int32)

    lp, hp = params["layers"], params["head"]
    args = (ids, mask, params["word_emb"], params["pos_emb"],
            params["emb_ln_g"], params["emb_ln_b"],
            lp["wq"], lp["bq"], lp["wk"], lp["bk"], lp["wv"], lp["bv"],
            lp["wo"], lp["bo"], lp["ln1_g"], lp["ln1_b"],
            lp["w1"], lp["b1"], lp["w2"], lp["b2"], lp["ln2_g"], lp["ln2_b"],
            hp["w1"], hp["b1"], hp["w2_pad"], hp["b2_pad"])

    vmem = pl.BlockSpec(memory_space=pltpu.MemorySpace.VMEM)
    logits_pad = pl.pallas_call(
        _build_fused_kernel(B, S),
        out_shape=jax.ShapeDtypeStruct((BS, LOGITS_PAD), jnp.float32),
        in_specs=[vmem] * len(args),
        out_specs=vmem,
    )(*args)
    # CLS rows (sequence position 0 of each batch) and real label columns.
    logits = logits_pad.reshape(B, S, LOGITS_PAD)[:, 0, :NUM_LABELS]

    if labels is not None:
        logz = jax.scipy.special.logsumexp(logits, axis=-1)
        nll = logz - jnp.take_along_axis(logits, labels[:, None], axis=1)[:, 0]
        return nll.mean(), logits
    return logits


# ----------------------------- main ------------------------------------------
if __name__ == "__main__":
    key = jax.random.PRNGKey(0)
    pkey, ikey = jax.random.split(key)

    B, S = 2, 8
    params = init_params(pkey)
    input_ids = jax.random.randint(ikey, (B, S), 0, VOCAB, dtype=jnp.int32)
    attention_mask = jnp.array([[1, 1, 1, 1, 1, 1, 1, 1],
                                [1, 1, 1, 1, 1, 0, 0, 0]], dtype=jnp.int32)
    labels = jnp.array([0, 2], dtype=jnp.int32)

    logits = deberta_with_dense_forward(params, input_ids, attention_mask)
    loss, logits2 = deberta_with_dense_forward(params, input_ids, attention_mask, labels)

    jax.block_until_ready((logits, loss, logits2))
    assert logits.shape == (B, NUM_LABELS)
    assert logits2.shape == (B, NUM_LABELS)
    print("KERNEL_OK")
</pallas_src>

<mosaic_0001>
module attributes {stable_mosaic.version = 11 : i64} {
  func.func @kernel(%arg0: memref<16x1xi32, #tpu.memory_space<vmem>>, %arg1: memref<2x1x8xi32, #tpu.memory_space<vmem>>, %arg2: memref<100x32xf32, #tpu.memory_space<vmem>>, %arg3: memref<16x32xf32, #tpu.memory_space<vmem>>, %arg4: memref<1x32xf32, #tpu.memory_space<vmem>>, %arg5: memref<1x32xf32, #tpu.memory_space<vmem>>, %arg6: memref<2x2x32x16xbf16, #tpu.memory_space<vmem>>, %arg7: memref<2x2x1x16xf32, #tpu.memory_space<vmem>>, %arg8: memref<2x2x32x16xbf16, #tpu.memory_space<vmem>>, %arg9: memref<2x2x1x16xf32, #tpu.memory_space<vmem>>, %arg10: memref<2x2x32x16xbf16, #tpu.memory_space<vmem>>, %arg11: memref<2x2x1x16xf32, #tpu.memory_space<vmem>>, %arg12: memref<2x32x32xbf16, #tpu.memory_space<vmem>>, %arg13: memref<2x1x32xf32, #tpu.memory_space<vmem>>, %arg14: memref<2x1x32xf32, #tpu.memory_space<vmem>>, %arg15: memref<2x1x32xf32, #tpu.memory_space<vmem>>, %arg16: memref<2x32x64xbf16, #tpu.memory_space<vmem>>, %arg17: memref<2x1x64xf32, #tpu.memory_space<vmem>>, %arg18: memref<2x64x32xbf16, #tpu.memory_space<vmem>>, %arg19: memref<2x1x32xf32, #tpu.memory_space<vmem>>, %arg20: memref<2x1x32xf32, #tpu.memory_space<vmem>>, %arg21: memref<2x1x32xf32, #tpu.memory_space<vmem>>, %arg22: memref<32x512xbf16, #tpu.memory_space<vmem>>, %arg23: memref<1x512xf32, #tpu.memory_space<vmem>>, %arg24: memref<512x128xbf16, #tpu.memory_space<vmem>>, %arg25: memref<1x128xf32, #tpu.memory_space<vmem>>, %arg26: memref<16x128xf32, #tpu.memory_space<vmem>>) attributes {dimension_semantics = [], scalar_prefetch = 0 : i64, scratch_operands = 0 : i64, tpu.core_type = #tpu.core_type<tc>} {
    %c0 = arith.constant 0 : index
    %c0_0 = arith.constant 0 : index
    %0 = vector.load %arg0[%c0, %c0_0] : memref<16x1xi32, #tpu.memory_space<vmem>>, vector<16x1xi32>
    %1 = tpu.iota {dimensions = array<i32: 1>} : vector<16x100xi32>
    %2 = vector.broadcast %0 : vector<16x1xi32> to vector<16x100xi32>
    %3 = arith.cmpi eq, %1, %2 : vector<16x100xi32>
    %4 = arith.extui %3 : vector<16x100xi1> to vector<16x100xi32>
    %5 = arith.sitofp %4 : vector<16x100xi32> to vector<16x100xf32>
    %c0_1 = arith.constant 0 : index
    %c0_2 = arith.constant 0 : index
    %6 = vector.load %arg2[%c0_1, %c0_2] : memref<100x32xf32, #tpu.memory_space<vmem>>, vector<100x32xf32>
    %cst = arith.constant dense<0.000000e+00> : vector<16x32xf32>
    %7 = tpu.matmul %5, %6, %cst {dimension_numbers = #tpu.dot_dimension_numbers<[1], [0], [0], [1], [0, 0, 1, 1], [], []>} : vector<16x100xf32>, vector<100x32xf32>, vector<16x32xf32> -> vector<16x32xf32>
    %8 = vector.shape_cast %7 : vector<16x32xf32> to vector<2x8x32xf32>
    %c0_3 = arith.constant 0 : index
    %c0_4 = arith.constant 0 : index
    %9 = vector.load %arg3[%c0_3, %c0_4] : memref<16x32xf32, #tpu.memory_space<vmem>>, vector<8x32xf32>
    %10 = vector.shape_cast %9 : vector<8x32xf32> to vector<1x8x32xf32>
    %11 = vector.broadcast %10 : vector<1x8x32xf32> to vector<2x8x32xf32>
    %12 = arith.addf %8, %11 : vector<2x8x32xf32>
    %13 = vector.shape_cast %12 : vector<2x8x32xf32> to vector<16x32xf32>
    %c0_5 = arith.constant 0 : index
    %c0_6 = arith.constant 0 : index
    %14 = vector.load %arg4[%c0_5, %c0_6] : memref<1x32xf32, #tpu.memory_space<vmem>>, vector<1x32xf32>
    %c0_7 = arith.constant 0 : index
    %c0_8 = arith.constant 0 : index
    %15 = vector.load %arg5[%c0_7, %c0_8] : memref<1x32xf32, #tpu.memory_space<vmem>>, vector<1x32xf32>
    %cst_9 = arith.constant dense<0.000000e+00> : vector<16xf32>
    %16 = vector.multi_reduction <add>, %13, %cst_9 [1] : vector<16x32xf32> to vector<16xf32>
    %17 = vector.shape_cast %16 : vector<16xf32> to vector<16x1xf32>
    %cst_10 = arith.constant 3.200000e+01 : f32
    %18 = vector.broadcast %cst_10 : f32 to vector<16x1xf32>
    %19 = arith.divf %17, %18 : vector<16x1xf32>
    %20 = vector.broadcast %19 : vector<16x1xf32> to vector<16x32xf32>
    %21 = arith.subf %13, %20 : vector<16x32xf32>
    %22 = arith.mulf %21, %21 : vector<16x32xf32>
    %cst_11 = arith.constant dense<0.000000e+00> : vector<16xf32>
    %23 = vector.multi_reduction <add>, %22, %cst_11 [1] : vector<16x32xf32> to vector<16xf32>
    %24 = vector.shape_cast %23 : vector<16xf32> to vector<16x1xf32>
    %cst_12 = arith.constant 3.200000e+01 : f32
    %25 = vector.broadcast %cst_12 : f32 to vector<16x1xf32>
    %26 = arith.divf %24, %25 : vector<16x1xf32>
    %27 = vector.broadcast %19 : vector<16x1xf32> to vector<16x32xf32>
    %28 = arith.subf %13, %27 : vector<16x32xf32>
    %cst_13 = arith.constant 1.000000e-07 : f32
    %29 = vector.broadcast %cst_13 : f32 to vector<16x1xf32>
    %30 = arith.addf %26, %29 : vector<16x1xf32>
    %31 = math.rsqrt %30 : vector<16x1xf32>
    %32 = vector.broadcast %31 : vector<16x1xf32> to vector<16x32xf32>
    %33 = arith.mulf %28, %32 : vector<16x32xf32>
    %34 = vector.broadcast %14 : vector<1x32xf32> to vector<16x32xf32>
    %35 = arith.mulf %33, %34 : vector<16x32xf32>
    %36 = vector.broadcast %15 : vector<1x32xf32> to vector<16x32xf32>
    %37 = arith.addf %35, %36 : vector<16x32xf32>
    %c0_14 = arith.constant 0 : index
    %c0_15 = arith.constant 0 : index
    %c0_16 = arith.constant 0 : index
    %38 = vector.load %arg1[%c0_14, %c0_15, %c0_16] : memref<2x1x8xi32, #tpu.memory_space<vmem>>, vector<2x1x8xi32>
    %39 = arith.sitofp %38 : vector<2x1x8xi32> to vector<2x1x8xf32>
    %cst_17 = arith.constant 1.000000e+00 : f32
    %40 = vector.broadcast %cst_17 : f32 to vector<2x1x8xf32>
    %41 = arith.subf %40, %39 : vector<2x1x8xf32>
    %cst_18 = arith.constant -1.000000e+09 : f32
    %42 = vector.broadcast %cst_18 : f32 to vector<2x1x8xf32>
    %43 = arith.mulf %41, %42 : vector<2x1x8xf32>
    %c0_19 = arith.constant 0 : index
    %c0_20 = arith.constant 0 : index
    %c0_21 = arith.constant 0 : index
    %c0_22 = arith.constant 0 : index
    %44 = vector.load %arg6[%c0_19, %c0_20, %c0_21, %c0_22] : memref<2x2x32x16xbf16, #tpu.memory_space<vmem>>, vector<1x2x32x16xbf16>
    %45 = vector.shape_cast %44 : vector<1x2x32x16xbf16> to vector<2x32x16xbf16>
    %c0_23 = arith.constant 0 : index
    %c0_24 = arith.constant 0 : index
    %c0_25 = arith.constant 0 : index
    %c0_26 = arith.constant 0 : index
    %46 = vector.load %arg8[%c0_23, %c0_24, %c0_25, %c0_26] : memref<2x2x32x16xbf16, #tpu.memory_space<vmem>>, vector<1x2x32x16xbf16>
    %47 = vector.shape_cast %46 : vector<1x2x32x16xbf16> to vector<2x32x16xbf16>
    %c0_27 = arith.constant 0 : index
    %c0_28 = arith.constant 0 : index
    %c0_29 = arith.constant 0 : index
    %c0_30 = arith.constant 0 : index
    %48 = vector.load %arg10[%c0_27, %c0_28, %c0_29, %c0_30] : memref<2x2x32x16xbf16, #tpu.memory_space<vmem>>, vector<1x2x32x16xbf16>
    %49 = vector.shape_cast %48 : vector<1x2x32x16xbf16> to vector<2x32x16xbf16>
    %c0_31 = arith.constant 0 : index
    %c0_32 = arith.constant 0 : index
    %c0_33 = arith.constant 0 : index
    %c0_34 = arith.constant 0 : index
    %50 = vector.load %arg7[%c0_31, %c0_32, %c0_33, %c0_34] : memref<2x2x1x16xf32, #tpu.memory_space<vmem>>, vector<1x2x1x16xf32>
    %51 = vector.shape_cast %50 : vector<1x2x1x16xf32> to vector<2x1x16xf32>
    %c0_35 = arith.constant 0 : index
    %c0_36 = arith.constant 0 : index
    %c0_37 = arith.constant 0 : index
    %c0_38 = arith.constant 0 : index
    %52 = vector.load %arg9[%c0_35, %c0_36, %c0_37, %c0_38] : memref<2x2x1x16xf32, #tpu.memory_space<vmem>>, vector<1x2x1x16xf32>
    %53 = vector.shape_cast %52 : vector<1x2x1x16xf32> to vector<2x1x16xf32>
    %c0_39 = arith.constant 0 : index
    %c0_40 = arith.constant 0 : index
    %c0_41 = arith.constant 0 : index
    %c0_42 = arith.constant 0 : index
    %54 = vector.load %arg11[%c0_39, %c0_40, %c0_41, %c0_42] : memref<2x2x1x16xf32, #tpu.memory_space<vmem>>, vector<1x2x1x16xf32>
    %55 = vector.shape_cast %54 : vector<1x2x1x16xf32> to vector<2x1x16xf32>
    %c0_43 = arith.constant 0 : index
    %c0_44 = arith.constant 0 : index
    %c0_45 = arith.constant 0 : index
    %56 = vector.load %arg12[%c0_43, %c0_44, %c0_45] : memref<2x32x32xbf16, #tpu.memory_space<vmem>>, vector<1x32x32xbf16>
    %57 = vector.shape_cast %56 : vector<1x32x32xbf16> to vector<32x32xbf16>
    %c0_46 = arith.constant 0 : index
    %c0_47 = arith.constant 0 : index
    %c0_48 = arith.constant 0 : index
    %58 = vector.load %arg13[%c0_46, %c0_47, %c0_48] : memref<2x1x32xf32, #tpu.memory_space<vmem>>, vector<1x1x32xf32>
    %59 = vector.shape_cast %58 : vector<1x1x32xf32> to vector<1x32xf32>
    %60 = arith.truncf %37 : vector<16x32xf32> to vector<16x32xbf16>
    %61 = vector.extract_strided_slice %45 {offsets = [0, 0, 0], sizes = [1, 32, 16], strides = [1, 1, 1]} : vector<2x32x16xbf16> to vector<1x32x16xbf16>
    %62 = vector.shape_cast %61 : vector<1x32x16xbf16> to vector<32x16xbf16>
    %cst_49 = arith.constant dense<0.000000e+00> : vector<16x16xf32>
    %63 = tpu.matmul %60, %62, %cst_49 {dimension_numbers = #tpu.dot_dimension_numbers<[1], [0], [0], [1], [0, 0, 1, 1], [], []>} : vector<16x32xbf16>, vector<32x16xbf16>, vector<16x16xf32> -> vector<16x16xf32>
    %64 = vector.extract_strided_slice %51 {offsets = [0, 0, 0], sizes = [1, 1, 16], strides = [1, 1, 1]} : vector<2x1x16xf32> to vector<1x1x16xf32>
    %65 = vector.shape_cast %64 : vector<1x1x16xf32> to vector<1x16xf32>
    %66 = vector.broadcast %65 : vector<1x16xf32> to vector<16x16xf32>
    %67 = arith.addf %63, %66 : vector<16x16xf32>
    %68 = vector.shape_cast %67 : vector<16x16xf32> to vector<2x8x16xf32>
    %69 = vector.extract_strided_slice %47 {offsets = [0, 0, 0], sizes = [1, 32, 16], strides = [1, 1, 1]} : vector<2x32x16xbf16> to vector<1x32x16xbf16>
    %70 = vector.shape_cast %69 : vector<1x32x16xbf16> to vector<32x16xbf16>
    %cst_50 = arith.constant dense<0.000000e+00> : vector<16x16xf32>
    %71 = tpu.matmul %60, %70, %cst_50 {dimension_numbers = #tpu.dot_dimension_numbers<[1], [0], [0], [1], [0, 0, 1, 1], [], []>} : vector<16x32xbf16>, vector<32x16xbf16>, vector<16x16xf32> -> vector<16x16xf32>
    %72 = vector.extract_strided_slice %53 {offsets = [0, 0, 0], sizes = [1, 1, 16], strides = [1, 1, 1]} : vector<2x1x16xf32> to vector<1x1x16xf32>
    %73 = vector.shape_cast %72 : vector<1x1x16xf32> to vector<1x16xf32>
    %74 = vector.broadcast %73 : vector<1x16xf32> to vector<16x16xf32>
    %75 = arith.addf %71, %74 : vector<16x16xf32>
    %76 = vector.shape_cast %75 : vector<16x16xf32> to vector<2x8x16xf32>
    %77 = vector.extract_strided_slice %49 {offsets = [0, 0, 0], sizes = [1, 32, 16], strides = [1, 1, 1]} : vector<2x32x16xbf16> to vector<1x32x16xbf16>
    %78 = vector.shape_cast %77 : vector<1x32x16xbf16> to vector<32x16xbf16>
    %cst_51 = arith.constant dense<0.000000e+00> : vector<16x16xf32>
    %79 = tpu.matmul %60, %78, %cst_51 {dimension_numbers = #tpu.dot_dimension_numbers<[1], [0], [0], [1], [0, 0, 1, 1], [], []>} : vector<16x32xbf16>, vector<32x16xbf16>, vector<16x16xf32> -> vector<16x16xf32>
    %80 = vector.extract_strided_slice %55 {offsets = [0, 0, 0], sizes = [1, 1, 16], strides = [1, 1, 1]} : vector<2x1x16xf32> to vector<1x1x16xf32>
    %81 = vector.shape_cast %80 : vector<1x1x16xf32> to vector<1x16xf32>
    %82 = vector.broadcast %81 : vector<1x16xf32> to vector<16x16xf32>
    %83 = arith.addf %79, %82 : vector<16x16xf32>
    %84 = vector.shape_cast %83 : vector<16x16xf32> to vector<2x8x16xf32>
    %85 = arith.truncf %68 : vector<2x8x16xf32> to vector<2x8x16xbf16>
    %86 = arith.truncf %76 : vector<2x8x16xf32> to vector<2x8x16xbf16>
    "tpu.trace_start"() <{level = 10 : i32, message = "bqd,bkd->bqk"}> : () -> ()
    %cst_52 = arith.constant dense<0.000000e+00> : vector<2x8x8xf32>
    %87 = tpu.matmul %85, %86, %cst_52 {dimension_numbers = #tpu.dot_dimension_numbers<[2], [2], [1], [1], [0, 0, 0, 1, 1, 1], [0], [0]>} : vector<2x8x16xbf16>, vector<2x8x16xbf16>, vector<2x8x8xf32> -> vector<2x8x8xf32>
    "tpu.trace_stop"() : () -> ()
    %88 = vector.broadcast %43 : vector<2x1x8xf32> to vector<2x8x8xf32>
    %89 = arith.addf %87, %88 : vector<2x8x8xf32>
    %90 = math.exp %89 : vector<2x8x8xf32>
    %cst_53 = arith.constant dense<0.000000e+00> : vector<2x8xf32>
    %91 = vector.multi_reduction <add>, %90, %cst_53 [2] : vector<2x8x8xf32> to vector<2x8xf32>
    %92 = vector.shape_cast %91 : vector<2x8xf32> to vector<2x8x1xf32>
    %93 = tpu.reciprocal %92 {approx = true} : vector<2x8x1xf32> -> vector<2x8x1xf32>
    %94 = vector.broadcast %93 : vector<2x8x1xf32> to vector<2x8x8xf32>
    %95 = arith.mulf %90, %94 : vector<2x8x8xf32>
    %96 = arith.truncf %95 : vector<2x8x8xf32> to vector<2x8x8xbf16>
    %97 = arith.truncf %84 : vector<2x8x16xf32> to vector<2x8x16xbf16>
    "tpu.trace_start"() <{level = 10 : i32, message = "bqk,bkd->bqd"}> : () -> ()
    %cst_54 = arith.constant dense<0.000000e+00> : vector<2x8x16xf32>
    %98 = tpu.matmul %96, %97, %cst_54 {dimension_numbers = #tpu.dot_dimension_numbers<[2], [1], [1], [2], [0, 0, 0, 1, 1, 2], [0], [0]>} : vector<2x8x8xbf16>, vector<2x8x16xbf16>, vector<2x8x16xf32> -> vector<2x8x16xf32>
    "tpu.trace_stop"() : () -> ()
    %99 = vector.shape_cast %98 : vector<2x8x16xf32> to vector<16x16xf32>
    %100 = arith.truncf %99 : vector<16x16xf32> to vector<16x16xbf16>
    %101 = vector.extract_strided_slice %57 {offsets = [0, 0], sizes = [16, 32], strides = [1, 1]} : vector<32x32xbf16> to vector<16x32xbf16>
    %cst_55 = arith.constant dense<0.000000e+00> : vector<16x32xf32>
    %102 = tpu.matmul %100, %101, %cst_55 {dimension_numbers = #tpu.dot_dimension_numbers<[1], [0], [0], [1], [0, 0, 1, 1], [], []>} : vector<16x16xbf16>, vector<16x32xbf16>, vector<16x32xf32> -> vector<16x32xf32>
    %103 = vector.broadcast %59 : vector<1x32xf32> to vector<16x32xf32>
    %104 = arith.addf %103, %102 : vector<16x32xf32>
    %105 = vector.extract_strided_slice %45 {offsets = [1, 0, 0], sizes = [1, 32, 16], strides = [1, 1, 1]} : vector<2x32x16xbf16> to vector<1x32x16xbf16>
    %106 = vector.shape_cast %105 : vector<1x32x16xbf16> to vector<32x16xbf16>
    %cst_56 = arith.constant dense<0.000000e+00> : vector<16x16xf32>
    %107 = tpu.matmul %60, %106, %cst_56 {dimension_numbers = #tpu.dot_dimension_numbers<[1], [0], [0], [1], [0, 0, 1, 1], [], []>} : vector<16x32xbf16>, vector<32x16xbf16>, vector<16x16xf32> -> vector<16x16xf32>
    %108 = vector.extract_strided_slice %51 {offsets = [1, 0, 0], sizes = [1, 1, 16], strides = [1, 1, 1]} : vector<2x1x16xf32> to vector<1x1x16xf32>
    %109 = vector.shape_cast %108 : vector<1x1x16xf32> to vector<1x16xf32>
    %110 = vector.broadcast %109 : vector<1x16xf32> to vector<16x16xf32>
    %111 = arith.addf %107, %110 : vector<16x16xf32>
    %112 = vector.shape_cast %111 : vector<16x16xf32> to vector<2x8x16xf32>
    %113 = vector.extract_strided_slice %47 {offsets = [1, 0, 0], sizes = [1, 32, 16], strides = [1, 1, 1]} : vector<2x32x16xbf16> to vector<1x32x16xbf16>
    %114 = vector.shape_cast %113 : vector<1x32x16xbf16> to vector<32x16xbf16>
    %cst_57 = arith.constant dense<0.000000e+00> : vector<16x16xf32>
    %115 = tpu.matmul %60, %114, %cst_57 {dimension_numbers = #tpu.dot_dimension_numbers<[1], [0], [0], [1], [0, 0, 1, 1], [], []>} : vector<16x32xbf16>, vector<32x16xbf16>, vector<16x16xf32> -> vector<16x16xf32>
    %116 = vector.extract_strided_slice %53 {offsets = [1, 0, 0], sizes = [1, 1, 16], strides = [1, 1, 1]} : vector<2x1x16xf32> to vector<1x1x16xf32>
    %117 = vector.shape_cast %116 : vector<1x1x16xf32> to vector<1x16xf32>
    %118 = vector.broadcast %117 : vector<1x16xf32> to vector<16x16xf32>
    %119 = arith.addf %115, %118 : vector<16x16xf32>
    %120 = vector.shape_cast %119 : vector<16x16xf32> to vector<2x8x16xf32>
    %121 = vector.extract_strided_slice %49 {offsets = [1, 0, 0], sizes = [1, 32, 16], strides = [1, 1, 1]} : vector<2x32x16xbf16> to vector<1x32x16xbf16>
    %122 = vector.shape_cast %121 : vector<1x32x16xbf16> to vector<32x16xbf16>
    %cst_58 = arith.constant dense<0.000000e+00> : vector<16x16xf32>
    %123 = tpu.matmul %60, %122, %cst_58 {dimension_numbers = #tpu.dot_dimension_numbers<[1], [0], [0], [1], [0, 0, 1, 1], [], []>} : vector<16x32xbf16>, vector<32x16xbf16>, vector<16x16xf32> -> vector<16x16xf32>
    %124 = vector.extract_strided_slice %55 {offsets = [1, 0, 0], sizes = [1, 1, 16], strides = [1, 1, 1]} : vector<2x1x16xf32> to vector<1x1x16xf32>
    %125 = vector.shape_cast %124 : vector<1x1x16xf32> to vector<1x16xf32>
    %126 = vector.broadcast %125 : vector<1x16xf32> to vector<16x16xf32>
    %127 = arith.addf %123, %126 : vector<16x16xf32>
    %128 = vector.shape_cast %127 : vector<16x16xf32> to vector<2x8x16xf32>
    %129 = arith.truncf %112 : vector<2x8x16xf32> to vector<2x8x16xbf16>
    %130 = arith.truncf %120 : vector<2x8x16xf32> to vector<2x8x16xbf16>
    "tpu.trace_start"() <{level = 10 : i32, message = "bqd,bkd->bqk"}> : () -> ()
    %cst_59 = arith.constant dense<0.000000e+00> : vector<2x8x8xf32>
    %131 = tpu.matmul %129, %130, %cst_59 {dimension_numbers = #tpu.dot_dimension_numbers<[2], [2], [1], [1], [0, 0, 0, 1, 1, 1], [0], [0]>} : vector<2x8x16xbf16>, vector<2x8x16xbf16>, vector<2x8x8xf32> -> vector<2x8x8xf32>
    "tpu.trace_stop"() : () -> ()
    %132 = vector.broadcast %43 : vector<2x1x8xf32> to vector<2x8x8xf32>
    %133 = arith.addf %131, %132 : vector<2x8x8xf32>
    %134 = math.exp %133 : vector<2x8x8xf32>
    %cst_60 = arith.constant dense<0.000000e+00> : vector<2x8xf32>
    %135 = vector.multi_reduction <add>, %134, %cst_60 [2] : vector<2x8x8xf32> to vector<2x8xf32>
    %136 = vector.shape_cast %135 : vector<2x8xf32> to vector<2x8x1xf32>
    %137 = tpu.reciprocal %136 {approx = true} : vector<2x8x1xf32> -> vector<2x8x1xf32>
    %138 = vector.broadcast %137 : vector<2x8x1xf32> to vector<2x8x8xf32>
    %139 = arith.mulf %134, %138 : vector<2x8x8xf32>
    %140 = arith.truncf %139 : vector<2x8x8xf32> to vector<2x8x8xbf16>
    %141 = arith.truncf %128 : vector<2x8x16xf32> to vector<2x8x16xbf16>
    "tpu.trace_start"() <{level = 10 : i32, message = "bqk,bkd->bqd"}> : () -> ()
    %cst_61 = arith.constant dense<0.000000e+00> : vector<2x8x16xf32>
    %142 = tpu.matmul %140, %141, %cst_61 {dimension_numbers = #tpu.dot_dimension_numbers<[2], [1], [1], [2], [0, 0, 0, 1, 1, 2], [0], [0]>} : vector<2x8x8xbf16>, vector<2x8x16xbf16>, vector<2x8x16xf32> -> vector<2x8x16xf32>
    "tpu.trace_stop"() : () -> ()
    %143 = vector.shape_cast %142 : vector<2x8x16xf32> to vector<16x16xf32>
    %144 = arith.truncf %143 : vector<16x16xf32> to vector<16x16xbf16>
    %145 = vector.extract_strided_slice %57 {offsets = [16, 0], sizes = [16, 32], strides = [1, 1]} : vector<32x32xbf16> to vector<16x32xbf16>
    %cst_62 = arith.constant dense<0.000000e+00> : vector<16x32xf32>
    %146 = tpu.matmul %144, %145, %cst_62 {dimension_numbers = #tpu.dot_dimension_numbers<[1], [0], [0], [1], [0, 0, 1, 1], [], []>} : vector<16x16xbf16>, vector<16x32xbf16>, vector<16x32xf32> -> vector<16x32xf32>
    %147 = arith.addf %104, %146 : vector<16x32xf32>
    %148 = arith.addf %37, %147 : vector<16x32xf32>
    %c0_63 = arith.constant 0 : index
    %c0_64 = arith.constant 0 : index
    %c0_65 = arith.constant 0 : index
    %149 = vector.load %arg14[%c0_63, %c0_64, %c0_65] : memref<2x1x32xf32, #tpu.memory_space<vmem>>, vector<1x1x32xf32>
    %150 = vector.shape_cast %149 : vector<1x1x32xf32> to vector<1x32xf32>
    %c0_66 = arith.constant 0 : index
    %c0_67 = arith.constant 0 : index
    %c0_68 = arith.constant 0 : index
    %151 = vector.load %arg15[%c0_66, %c0_67, %c0_68] : memref<2x1x32xf32, #tpu.memory_space<vmem>>, vector<1x1x32xf32>
    %152 = vector.shape_cast %151 : vector<1x1x32xf32> to vector<1x32xf32>
    %cst_69 = arith.constant dense<0.000000e+00> : vector<16xf32>
    %153 = vector.multi_reduction <add>, %148, %cst_69 [1] : vector<16x32xf32> to vector<16xf32>
    %154 = vector.shape_cast %153 : vector<16xf32> to vector<16x1xf32>
    %cst_70 = arith.constant 3.200000e+01 : f32
    %155 = vector.broadcast %cst_70 : f32 to vector<16x1xf32>
    %156 = arith.divf %154, %155 : vector<16x1xf32>
    %157 = vector.broadcast %156 : vector<16x1xf32> to vector<16x32xf32>
    %158 = arith.subf %148, %157 : vector<16x32xf32>
    %159 = arith.mulf %158, %158 : vector<16x32xf32>
    %cst_71 = arith.constant dense<0.000000e+00> : vector<16xf32>
    %160 = vector.multi_reduction <add>, %159, %cst_71 [1] : vector<16x32xf32> to vector<16xf32>
    %161 = vector.shape_cast %160 : vector<16xf32> to vector<16x1xf32>
    %cst_72 = arith.constant 3.200000e+01 : f32
    %162 = vector.broadcast %cst_72 : f32 to vector<16x1xf32>
    %163 = arith.divf %161, %162 : vector<16x1xf32>
    %164 = vector.broadcast %156 : vector<16x1xf32> to vector<16x32xf32>
    %165 = arith.subf %148, %164 : vector<16x32xf32>
    %cst_73 = arith.constant 1.000000e-07 : f32
    %166 = vector.broadcast %cst_73 : f32 to vector<16x1xf32>
    %167 = arith.addf %163, %166 : vector<16x1xf32>
    %168 = math.rsqrt %167 : vector<16x1xf32>
    %169 = vector.broadcast %168 : vector<16x1xf32> to vector<16x32xf32>
    %170 = arith.mulf %165, %169 : vector<16x32xf32>
    %171 = vector.broadcast %150 : vector<1x32xf32> to vector<16x32xf32>
    %172 = arith.mulf %170, %171 : vector<16x32xf32>
    %173 = vector.broadcast %152 : vector<1x32xf32> to vector<16x32xf32>
    %174 = arith.addf %172, %173 : vector<16x32xf32>
    %175 = arith.truncf %174 : vector<16x32xf32> to vector<16x32xbf16>
    %c0_74 = arith.constant 0 : index
    %c0_75 = arith.constant 0 : index
    %c0_76 = arith.constant 0 : index
    %176 = vector.load %arg16[%c0_74, %c0_75, %c0_76] : memref<2x32x64xbf16, #tpu.memory_space<vmem>>, vector<1x32x64xbf16>
    %177 = vector.shape_cast %176 : vector<1x32x64xbf16> to vector<32x64xbf16>
    %cst_77 = arith.constant dense<0.000000e+00> : vector<16x64xf32>
    %178 = tpu.matmul %175, %177, %cst_77 {dimension_numbers = #tpu.dot_dimension_numbers<[1], [0], [0], [1], [0, 0, 1, 1], [], []>} : vector<16x32xbf16>, vector<32x64xbf16>, vector<16x64xf32> -> vector<16x64xf32>
    %c0_78 = arith.constant 0 : index
    %c0_79 = arith.constant 0 : index
    %c0_80 = arith.constant 0 : index
    %179 = vector.load %arg17[%c0_78, %c0_79, %c0_80] : memref<2x1x64xf32, #tpu.memory_space<vmem>>, vector<1x1x64xf32>
    %180 = vector.shape_cast %179 : vector<1x1x64xf32> to vector<1x64xf32>
    %181 = vector.broadcast %180 : vector<1x64xf32> to vector<16x64xf32>
    %182 = arith.addf %178, %181 : vector<16x64xf32>
    %183 = arith.mulf %182, %182 : vector<16x64xf32>
    %184 = arith.mulf %182, %183 : vector<16x64xf32>
    %cst_81 = arith.constant 4.471500e-02 : f32
    %185 = vector.broadcast %cst_81 : f32 to vector<16x64xf32>
    %186 = arith.mulf %185, %184 : vector<16x64xf32>
    %187 = arith.addf %182, %186 : vector<16x64xf32>
    %cst_82 = arith.constant 0.797884583 : f32
    %188 = vector.broadcast %cst_82 : f32 to vector<16x64xf32>
    %189 = arith.mulf %188, %187 : vector<16x64xf32>
    %190 = math.tanh %189 : vector<16x64xf32>
    %cst_83 = arith.constant 1.000000e+00 : f32
    %191 = vector.broadcast %cst_83 : f32 to vector<16x64xf32>
    %192 = arith.addf %191, %190 : vector<16x64xf32>
    %cst_84 = arith.constant 5.000000e-01 : f32
    %193 = vector.broadcast %cst_84 : f32 to vector<16x64xf32>
    %194 = arith.mulf %193, %192 : vector<16x64xf32>
    %195 = arith.mulf %182, %194 : vector<16x64xf32>
    %196 = arith.truncf %195 : vector<16x64xf32> to vector<16x64xbf16>
    %c0_85 = arith.constant 0 : index
    %c0_86 = arith.constant 0 : index
    %c0_87 = arith.constant 0 : index
    %197 = vector.load %arg18[%c0_85, %c0_86, %c0_87] : memref<2x64x32xbf16, #tpu.memory_space<vmem>>, vector<1x64x32xbf16>
    %198 = vector.shape_cast %197 : vector<1x64x32xbf16> to vector<64x32xbf16>
    %cst_88 = arith.constant dense<0.000000e+00> : vector<16x32xf32>
    %199 = tpu.matmul %196, %198, %cst_88 {dimension_numbers = #tpu.dot_dimension_numbers<[1], [0], [0], [1], [0, 0, 1, 1], [], []>} : vector<16x64xbf16>, vector<64x32xbf16>, vector<16x32xf32> -> vector<16x32xf32>
    %c0_89 = arith.constant 0 : index
    %c0_90 = arith.constant 0 : index
    %c0_91 = arith.constant 0 : index
    %200 = vector.load %arg19[%c0_89, %c0_90, %c0_91] : memref<2x1x32xf32, #tpu.memory_space<vmem>>, vector<1x1x32xf32>
    %201 = vector.shape_cast %200 : vector<1x1x32xf32> to vector<1x32xf32>
    %202 = vector.broadcast %201 : vector<1x32xf32> to vector<16x32xf32>
    %203 = arith.addf %199, %202 : vector<16x32xf32>
    %204 = arith.addf %174, %203 : vector<16x32xf32>
    %c0_92 = arith.constant 0 : index
    %c0_93 = arith.constant 0 : index
    %c0_94 = arith.constant 0 : index
    %205 = vector.load %arg20[%c0_92, %c0_93, %c0_94] : memref<2x1x32xf32, #tpu.memory_space<vmem>>, vector<1x1x32xf32>
    %206 = vector.shape_cast %205 : vector<1x1x32xf32> to vector<1x32xf32>
    %c0_95 = arith.constant 0 : index
    %c0_96 = arith.constant 0 : index
    %c0_97 = arith.constant 0 : index
    %207 = vector.load %arg21[%c0_95, %c0_96, %c0_97] : memref<2x1x32xf32, #tpu.memory_space<vmem>>, vector<1x1x32xf32>
    %208 = vector.shape_cast %207 : vector<1x1x32xf32> to vector<1x32xf32>
    %cst_98 = arith.constant dense<0.000000e+00> : vector<16xf32>
    %209 = vector.multi_reduction <add>, %204, %cst_98 [1] : vector<16x32xf32> to vector<16xf32>
    %210 = vector.shape_cast %209 : vector<16xf32> to vector<16x1xf32>
    %cst_99 = arith.constant 3.200000e+01 : f32
    %211 = vector.broadcast %cst_99 : f32 to vector<16x1xf32>
    %212 = arith.divf %210, %211 : vector<16x1xf32>
    %213 = vector.broadcast %212 : vector<16x1xf32> to vector<16x32xf32>
    %214 = arith.subf %204, %213 : vector<16x32xf32>
    %215 = arith.mulf %214, %214 : vector<16x32xf32>
    %cst_100 = arith.constant dense<0.000000e+00> : vector<16xf32>
    %216 = vector.multi_reduction <add>, %215, %cst_100 [1] : vector<16x32xf32> to vector<16xf32>
    %217 = vector.shape_cast %216 : vector<16xf32> to vector<16x1xf32>
    %cst_101 = arith.constant 3.200000e+01 : f32
    %218 = vector.broadcast %cst_101 : f32 to vector<16x1xf32>
    %219 = arith.divf %217, %218 : vector<16x1xf32>
    %220 = vector.broadcast %212 : vector<16x1xf32> to vector<16x32xf32>
    %221 = arith.subf %204, %220 : vector<16x32xf32>
    %cst_102 = arith.constant 1.000000e-07 : f32
    %222 = vector.broadcast %cst_102 : f32 to vector<16x1xf32>
    %223 = arith.addf %219, %222 : vector<16x1xf32>
    %224 = math.rsqrt %223 : vector<16x1xf32>
    %225 = vector.broadcast %224 : vector<16x1xf32> to vector<16x32xf32>
    %226 = arith.mulf %221, %225 : vector<16x32xf32>
    %227 = vector.broadcast %206 : vector<1x32xf32> to vector<16x32xf32>
    %228 = arith.mulf %226, %227 : vector<16x32xf32>
    %229 = vector.broadcast %208 : vector<1x32xf32> to vector<16x32xf32>
    %230 = arith.addf %228, %229 : vector<16x32xf32>
    %c1 = arith.constant 1 : index
    %c0_103 = arith.constant 0 : index
    %c0_104 = arith.constant 0 : index
    %c0_105 = arith.constant 0 : index
    %231 = vector.load %arg6[%c1, %c0_103, %c0_104, %c0_105] : memref<2x2x32x16xbf16, #tpu.memory_space<vmem>>, vector<1x2x32x16xbf16>
    %232 = vector.shape_cast %231 : vector<1x2x32x16xbf16> to vector<2x32x16xbf16>
    %c1_106 = arith.constant 1 : index
    %c0_107 = arith.constant 0 : index
    %c0_108 = arith.constant 0 : index
    %c0_109 = arith.constant 0 : index
    %233 = vector.load %arg8[%c1_106, %c0_107, %c0_108, %c0_109] : memref<2x2x32x16xbf16, #tpu.memory_space<vmem>>, vector<1x2x32x16xbf16>
    %234 = vector.shape_cast %233 : vector<1x2x32x16xbf16> to vector<2x32x16xbf16>
    %c1_110 = arith.constant 1 : index
    %c0_111 = arith.constant 0 : index
    %c0_112 = arith.constant 0 : index
    %c0_113 = arith.constant 0 : index
    %235 = vector.load %arg10[%c1_110, %c0_111, %c0_112, %c0_113] : memref<2x2x32x16xbf16, #tpu.memory_space<vmem>>, vector<1x2x32x16xbf16>
    %236 = vector.shape_cast %235 : vector<1x2x32x16xbf16> to vector<2x32x16xbf16>
    %c1_114 = arith.constant 1 : index
    %c0_115 = arith.constant 0 : index
    %c0_116 = arith.constant 0 : index
    %c0_117 = arith.constant 0 : index
    %237 = vector.load %arg7[%c1_114, %c0_115, %c0_116, %c0_117] : memref<2x2x1x16xf32, #tpu.memory_space<vmem>>, vector<1x2x1x16xf32>
    %238 = vector.shape_cast %237 : vector<1x2x1x16xf32> to vector<2x1x16xf32>
    %c1_118 = arith.constant 1 : index
    %c0_119 = arith.constant 0 : index
    %c0_120 = arith.constant 0 : index
    %c0_121 = arith.constant 0 : index
    %239 = vector.load %arg9[%c1_118, %c0_119, %c0_120, %c0_121] : memref<2x2x1x16xf32, #tpu.memory_space<vmem>>, vector<1x2x1x16xf32>
    %240 = vector.shape_cast %239 : vector<1x2x1x16xf32> to vector<2x1x16xf32>
    %c1_122 = arith.constant 1 : index
    %c0_123 = arith.constant 0 : index
    %c0_124 = arith.constant 0 : index
    %c0_125 = arith.constant 0 : index
    %241 = vector.load %arg11[%c1_122, %c0_123, %c0_124, %c0_125] : memref<2x2x1x16xf32, #tpu.memory_space<vmem>>, vector<1x2x1x16xf32>
    %242 = vector.shape_cast %241 : vector<1x2x1x16xf32> to vector<2x1x16xf32>
    %c1_126 = arith.constant 1 : index
    %c0_127 = arith.constant 0 : index
    %c0_128 = arith.constant 0 : index
    %243 = vector.load %arg12[%c1_126, %c0_127, %c0_128] : memref<2x32x32xbf16, #tpu.memory_space<vmem>>, vector<1x32x32xbf16>
    %244 = vector.shape_cast %243 : vector<1x32x32xbf16> to vector<32x32xbf16>
    %c1_129 = arith.constant 1 : index
    %c0_130 = arith.constant 0 : index
    %c0_131 = arith.constant 0 : index
    %245 = vector.load %arg13[%c1_129, %c0_130, %c0_131] : memref<2x1x32xf32, #tpu.memory_space<vmem>>, vector<1x1x32xf32>
    %246 = vector.shape_cast %245 : vector<1x1x32xf32> to vector<1x32xf32>
    %247 = arith.truncf %230 : vector<16x32xf32> to vector<16x32xbf16>
    %248 = vector.extract_strided_slice %232 {offsets = [0, 0, 0], sizes = [1, 32, 16], strides = [1, 1, 1]} : vector<2x32x16xbf16> to vector<1x32x16xbf16>
    %249 = vector.shape_cast %248 : vector<1x32x16xbf16> to vector<32x16xbf16>
    %cst_132 = arith.constant dense<0.000000e+00> : vector<16x16xf32>
    %250 = tpu.matmul %247, %249, %cst_132 {dimension_numbers = #tpu.dot_dimension_numbers<[1], [0], [0], [1], [0, 0, 1, 1], [], []>} : vector<16x32xbf16>, vector<32x16xbf16>, vector<16x16xf32> -> vector<16x16xf32>
    %251 = vector.extract_strided_slice %238 {offsets = [0, 0, 0], sizes = [1, 1, 16], strides = [1, 1, 1]} : vector<2x1x16xf32> to vector<1x1x16xf32>
    %252 = vector.shape_cast %251 : vector<1x1x16xf32> to vector<1x16xf32>
    %253 = vector.broadcast %252 : vector<1x16xf32> to vector<16x16xf32>
    %254 = arith.addf %250, %253 : vector<16x16xf32>
    %255 = vector.shape_cast %254 : vector<16x16xf32> to vector<2x8x16xf32>
    %256 = vector.extract_strided_slice %234 {offsets = [0, 0, 0], sizes = [1, 32, 16], strides = [1, 1, 1]} : vector<2x32x16xbf16> to vector<1x32x16xbf16>
    %257 = vector.shape_cast %256 : vector<1x32x16xbf16> to vector<32x16xbf16>
    %cst_133 = arith.constant dense<0.000000e+00> : vector<16x16xf32>
    %258 = tpu.matmul %247, %257, %cst_133 {dimension_numbers = #tpu.dot_dimension_numbers<[1], [0], [0], [1], [0, 0, 1, 1], [], []>} : vector<16x32xbf16>, vector<32x16xbf16>, vector<16x16xf32> -> vector<16x16xf32>
    %259 = vector.extract_strided_slice %240 {offsets = [0, 0, 0], sizes = [1, 1, 16], strides = [1, 1, 1]} : vector<2x1x16xf32> to vector<1x1x16xf32>
    %260 = vector.shape_cast %259 : vector<1x1x16xf32> to vector<1x16xf32>
    %261 = vector.broadcast %260 : vector<1x16xf32> to vector<16x16xf32>
    %262 = arith.addf %258, %261 : vector<16x16xf32>
    %263 = vector.shape_cast %262 : vector<16x16xf32> to vector<2x8x16xf32>
    %264 = vector.extract_strided_slice %236 {offsets = [0, 0, 0], sizes = [1, 32, 16], strides = [1, 1, 1]} : vector<2x32x16xbf16> to vector<1x32x16xbf16>
    %265 = vector.shape_cast %264 : vector<1x32x16xbf16> to vector<32x16xbf16>
    %cst_134 = arith.constant dense<0.000000e+00> : vector<16x16xf32>
    %266 = tpu.matmul %247, %265, %cst_134 {dimension_numbers = #tpu.dot_dimension_numbers<[1], [0], [0], [1], [0, 0, 1, 1], [], []>} : vector<16x32xbf16>, vector<32x16xbf16>, vector<16x16xf32> -> vector<16x16xf32>
    %267 = vector.extract_strided_slice %242 {offsets = [0, 0, 0], sizes = [1, 1, 16], strides = [1, 1, 1]} : vector<2x1x16xf32> to vector<1x1x16xf32>
    %268 = vector.shape_cast %267 : vector<1x1x16xf32> to vector<1x16xf32>
    %269 = vector.broadcast %268 : vector<1x16xf32> to vector<16x16xf32>
    %270 = arith.addf %266, %269 : vector<16x16xf32>
    %271 = vector.shape_cast %270 : vector<16x16xf32> to vector<2x8x16xf32>
    %272 = arith.truncf %255 : vector<2x8x16xf32> to vector<2x8x16xbf16>
    %273 = arith.truncf %263 : vector<2x8x16xf32> to vector<2x8x16xbf16>
    "tpu.trace_start"() <{level = 10 : i32, message = "bqd,bkd->bqk"}> : () -> ()
    %cst_135 = arith.constant dense<0.000000e+00> : vector<2x8x8xf32>
    %274 = tpu.matmul %272, %273, %cst_135 {dimension_numbers = #tpu.dot_dimension_numbers<[2], [2], [1], [1], [0, 0, 0, 1, 1, 1], [0], [0]>} : vector<2x8x16xbf16>, vector<2x8x16xbf16>, vector<2x8x8xf32> -> vector<2x8x8xf32>
    "tpu.trace_stop"() : () -> ()
    %275 = vector.broadcast %43 : vector<2x1x8xf32> to vector<2x8x8xf32>
    %276 = arith.addf %274, %275 : vector<2x8x8xf32>
    %277 = math.exp %276 : vector<2x8x8xf32>
    %cst_136 = arith.constant dense<0.000000e+00> : vector<2x8xf32>
    %278 = vector.multi_reduction <add>, %277, %cst_136 [2] : vector<2x8x8xf32> to vector<2x8xf32>
    %279 = vector.shape_cast %278 : vector<2x8xf32> to vector<2x8x1xf32>
    %280 = tpu.reciprocal %279 {approx = true} : vector<2x8x1xf32> -> vector<2x8x1xf32>
    %281 = vector.broadcast %280 : vector<2x8x1xf32> to vector<2x8x8xf32>
    %282 = arith.mulf %277, %281 : vector<2x8x8xf32>
    %283 = arith.truncf %282 : vector<2x8x8xf32> to vector<2x8x8xbf16>
    %284 = arith.truncf %271 : vector<2x8x16xf32> to vector<2x8x16xbf16>
    "tpu.trace_start"() <{level = 10 : i32, message = "bqk,bkd->bqd"}> : () -> ()
    %cst_137 = arith.constant dense<0.000000e+00> : vector<2x8x16xf32>
    %285 = tpu.matmul %283, %284, %cst_137 {dimension_numbers = #tpu.dot_dimension_numbers<[2], [1], [1], [2], [0, 0, 0, 1, 1, 2], [0], [0]>} : vector<2x8x8xbf16>, vector<2x8x16xbf16>, vector<2x8x16xf32> -> vector<2x8x16xf32>
    "tpu.trace_stop"() : () -> ()
    %286 = vector.shape_cast %285 : vector<2x8x16xf32> to vector<16x16xf32>
    %287 = arith.truncf %286 : vector<16x16xf32> to vector<16x16xbf16>
    %288 = vector.extract_strided_slice %244 {offsets = [0, 0], sizes = [16, 32], strides = [1, 1]} : vector<32x32xbf16> to vector<16x32xbf16>
    %cst_138 = arith.constant dense<0.000000e+00> : vector<16x32xf32>
    %289 = tpu.matmul %287, %288, %cst_138 {dimension_numbers = #tpu.dot_dimension_numbers<[1], [0], [0], [1], [0, 0, 1, 1], [], []>} : vector<16x16xbf16>, vector<16x32xbf16>, vector<16x32xf32> -> vector<16x32xf32>
    %290 = vector.broadcast %246 : vector<1x32xf32> to vector<16x32xf32>
    %291 = arith.addf %290, %289 : vector<16x32xf32>
    %292 = vector.extract_strided_slice %232 {offsets = [1, 0, 0], sizes = [1, 32, 16], strides = [1, 1, 1]} : vector<2x32x16xbf16> to vector<1x32x16xbf16>
    %293 = vector.shape_cast %292 : vector<1x32x16xbf16> to vector<32x16xbf16>
    %cst_139 = arith.constant dense<0.000000e+00> : vector<16x16xf32>
    %294 = tpu.matmul %247, %293, %cst_139 {dimension_numbers = #tpu.dot_dimension_numbers<[1], [0], [0], [1], [0, 0, 1, 1], [], []>} : vector<16x32xbf16>, vector<32x16xbf16>, vector<16x16xf32> -> vector<16x16xf32>
    %295 = vector.extract_strided_slice %238 {offsets = [1, 0, 0], sizes = [1, 1, 16], strides = [1, 1, 1]} : vector<2x1x16xf32> to vector<1x1x16xf32>
    %296 = vector.shape_cast %295 : vector<1x1x16xf32> to vector<1x16xf32>
    %297 = vector.broadcast %296 : vector<1x16xf32> to vector<16x16xf32>
    %298 = arith.addf %294, %297 : vector<16x16xf32>
    %299 = vector.shape_cast %298 : vector<16x16xf32> to vector<2x8x16xf32>
    %300 = vector.extract_strided_slice %234 {offsets = [1, 0, 0], sizes = [1, 32, 16], strides = [1, 1, 1]} : vector<2x32x16xbf16> to vector<1x32x16xbf16>
    %301 = vector.shape_cast %300 : vector<1x32x16xbf16> to vector<32x16xbf16>
    %cst_140 = arith.constant dense<0.000000e+00> : vector<16x16xf32>
    %302 = tpu.matmul %247, %301, %cst_140 {dimension_numbers = #tpu.dot_dimension_numbers<[1], [0], [0], [1], [0, 0, 1, 1], [], []>} : vector<16x32xbf16>, vector<32x16xbf16>, vector<16x16xf32> -> vector<16x16xf32>
    %303 = vector.extract_strided_slice %240 {offsets = [1, 0, 0], sizes = [1, 1, 16], strides = [1, 1, 1]} : vector<2x1x16xf32> to vector<1x1x16xf32>
    %304 = vector.shape_cast %303 : vector<1x1x16xf32> to vector<1x16xf32>
    %305 = vector.broadcast %304 : vector<1x16xf32> to vector<16x16xf32>
    %306 = arith.addf %302, %305 : vector<16x16xf32>
    %307 = vector.shape_cast %306 : vector<16x16xf32> to vector<2x8x16xf32>
    %308 = vector.extract_strided_slice %236 {offsets = [1, 0, 0], sizes = [1, 32, 16], strides = [1, 1, 1]} : vector<2x32x16xbf16> to vector<1x32x16xbf16>
    %309 = vector.shape_cast %308 : vector<1x32x16xbf16> to vector<32x16xbf16>
    %cst_141 = arith.constant dense<0.000000e+00> : vector<16x16xf32>
    %310 = tpu.matmul %247, %309, %cst_141 {dimension_numbers = #tpu.dot_dimension_numbers<[1], [0], [0], [1], [0, 0, 1, 1], [], []>} : vector<16x32xbf16>, vector<32x16xbf16>, vector<16x16xf32> -> vector<16x16xf32>
    %311 = vector.extract_strided_slice %242 {offsets = [1, 0, 0], sizes = [1, 1, 16], strides = [1, 1, 1]} : vector<2x1x16xf32> to vector<1x1x16xf32>
    %312 = vector.shape_cast %311 : vector<1x1x16xf32> to vector<1x16xf32>
    %313 = vector.broadcast %312 : vector<1x16xf32> to vector<16x16xf32>
    %314 = arith.addf %310, %313 : vector<16x16xf32>
    %315 = vector.shape_cast %314 : vector<16x16xf32> to vector<2x8x16xf32>
    %316 = arith.truncf %299 : vector<2x8x16xf32> to vector<2x8x16xbf16>
    %317 = arith.truncf %307 : vector<2x8x16xf32> to vector<2x8x16xbf16>
    "tpu.trace_start"() <{level = 10 : i32, message = "bqd,bkd->bqk"}> : () -> ()
    %cst_142 = arith.constant dense<0.000000e+00> : vector<2x8x8xf32>
    %318 = tpu.matmul %316, %317, %cst_142 {dimension_numbers = #tpu.dot_dimension_numbers<[2], [2], [1], [1], [0, 0, 0, 1, 1, 1], [0], [0]>} : vector<2x8x16xbf16>, vector<2x8x16xbf16>, vector<2x8x8xf32> -> vector<2x8x8xf32>
    "tpu.trace_stop"() : () -> ()
    %319 = vector.broadcast %43 : vector<2x1x8xf32> to vector<2x8x8xf32>
    %320 = arith.addf %318, %319 : vector<2x8x8xf32>
    %321 = math.exp %320 : vector<2x8x8xf32>
    %cst_143 = arith.constant dense<0.000000e+00> : vector<2x8xf32>
    %322 = vector.multi_reduction <add>, %321, %cst_143 [2] : vector<2x8x8xf32> to vector<2x8xf32>
    %323 = vector.shape_cast %322 : vector<2x8xf32> to vector<2x8x1xf32>
    %324 = tpu.reciprocal %323 {approx = true} : vector<2x8x1xf32> -> vector<2x8x1xf32>
    %325 = vector.broadcast %324 : vector<2x8x1xf32> to vector<2x8x8xf32>
    %326 = arith.mulf %321, %325 : vector<2x8x8xf32>
    %327 = arith.truncf %326 : vector<2x8x8xf32> to vector<2x8x8xbf16>
    %328 = arith.truncf %315 : vector<2x8x16xf32> to vector<2x8x16xbf16>
    "tpu.trace_start"() <{level = 10 : i32, message = "bqk,bkd->bqd"}> : () -> ()
    %cst_144 = arith.constant dense<0.000000e+00> : vector<2x8x16xf32>
    %329 = tpu.matmul %327, %328, %cst_144 {dimension_numbers = #tpu.dot_dimension_numbers<[2], [1], [1], [2], [0, 0, 0, 1, 1, 2], [0], [0]>} : vector<2x8x8xbf16>, vector<2x8x16xbf16>, vector<2x8x16xf32> -> vector<2x8x16xf32>
    "tpu.trace_stop"() : () -> ()
    %330 = vector.shape_cast %329 : vector<2x8x16xf32> to vector<16x16xf32>
    %331 = arith.truncf %330 : vector<16x16xf32> to vector<16x16xbf16>
    %332 = vector.extract_strided_slice %244 {offsets = [16, 0], sizes = [16, 32], strides = [1, 1]} : vector<32x32xbf16> to vector<16x32xbf16>
    %cst_145 = arith.constant dense<0.000000e+00> : vector<16x32xf32>
    %333 = tpu.matmul %331, %332, %cst_145 {dimension_numbers = #tpu.dot_dimension_numbers<[1], [0], [0], [1], [0, 0, 1, 1], [], []>} : vector<16x16xbf16>, vector<16x32xbf16>, vector<16x32xf32> -> vector<16x32xf32>
    %334 = arith.addf %291, %333 : vector<16x32xf32>
    %335 = arith.addf %230, %334 : vector<16x32xf32>
    %c1_146 = arith.constant 1 : index
    %c0_147 = arith.constant 0 : index
    %c0_148 = arith.constant 0 : index
    %336 = vector.load %arg14[%c1_146, %c0_147, %c0_148] : memref<2x1x32xf32, #tpu.memory_space<vmem>>, vector<1x1x32xf32>
    %337 = vector.shape_cast %336 : vector<1x1x32xf32> to vector<1x32xf32>
    %c1_149 = arith.constant 1 : index
    %c0_150 = arith.constant 0 : index
    %c0_151 = arith.constant 0 : index
    %338 = vector.load %arg15[%c1_149, %c0_150, %c0_151] : memref<2x1x32xf32, #tpu.memory_space<vmem>>, vector<1x1x32xf32>
    %339 = vector.shape_cast %338 : vector<1x1x32xf32> to vector<1x32xf32>
    %cst_152 = arith.constant dense<0.000000e+00> : vector<16xf32>
    %340 = vector.multi_reduction <add>, %335, %cst_152 [1] : vector<16x32xf32> to vector<16xf32>
    %341 = vector.shape_cast %340 : vector<16xf32> to vector<16x1xf32>
    %cst_153 = arith.constant 3.200000e+01 : f32
    %342 = vector.broadcast %cst_153 : f32 to vector<16x1xf32>
    %343 = arith.divf %341, %342 : vector<16x1xf32>
    %344 = vector.broadcast %343 : vector<16x1xf32> to vector<16x32xf32>
    %345 = arith.subf %335, %344 : vector<16x32xf32>
    %346 = arith.mulf %345, %345 : vector<16x32xf32>
    %cst_154 = arith.constant dense<0.000000e+00> : vector<16xf32>
    %347 = vector.multi_reduction <add>, %346, %cst_154 [1] : vector<16x32xf32> to vector<16xf32>
    %348 = vector.shape_cast %347 : vector<16xf32> to vector<16x1xf32>
    %cst_155 = arith.constant 3.200000e+01 : f32
    %349 = vector.broadcast %cst_155 : f32 to vector<16x1xf32>
    %350 = arith.divf %348, %349 : vector<16x1xf32>
    %351 = vector.broadcast %343 : vector<16x1xf32> to vector<16x32xf32>
    %352 = arith.subf %335, %351 : vector<16x32xf32>
    %cst_156 = arith.constant 1.000000e-07 : f32
    %353 = vector.broadcast %cst_156 : f32 to vector<16x1xf32>
    %354 = arith.addf %350, %353 : vector<16x1xf32>
    %355 = math.rsqrt %354 : vector<16x1xf32>
    %356 = vector.broadcast %355 : vector<16x1xf32> to vector<16x32xf32>
    %357 = arith.mulf %352, %356 : vector<16x32xf32>
    %358 = vector.broadcast %337 : vector<1x32xf32> to vector<16x32xf32>
    %359 = arith.mulf %357, %358 : vector<16x32xf32>
    %360 = vector.broadcast %339 : vector<1x32xf32> to vector<16x32xf32>
    %361 = arith.addf %359, %360 : vector<16x32xf32>
    %362 = arith.truncf %361 : vector<16x32xf32> to vector<16x32xbf16>
    %c1_157 = arith.constant 1 : index
    %c0_158 = arith.constant 0 : index
    %c0_159 = arith.constant 0 : index
    %363 = vector.load %arg16[%c1_157, %c0_158, %c0_159] : memref<2x32x64xbf16, #tpu.memory_space<vmem>>, vector<1x32x64xbf16>
    %364 = vector.shape_cast %363 : vector<1x32x64xbf16> to vector<32x64xbf16>
    %cst_160 = arith.constant dense<0.000000e+00> : vector<16x64xf32>
    %365 = tpu.matmul %362, %364, %cst_160 {dimension_numbers = #tpu.dot_dimension_numbers<[1], [0], [0], [1], [0, 0, 1, 1], [], []>} : vector<16x32xbf16>, vector<32x64xbf16>, vector<16x64xf32> -> vector<16x64xf32>
    %c1_161 = arith.constant 1 : index
    %c0_162 = arith.constant 0 : index
    %c0_163 = arith.constant 0 : index
    %366 = vector.load %arg17[%c1_161, %c0_162, %c0_163] : memref<2x1x64xf32, #tpu.memory_space<vmem>>, vector<1x1x64xf32>
    %367 = vector.shape_cast %366 : vector<1x1x64xf32> to vector<1x64xf32>
    %368 = vector.broadcast %367 : vector<1x64xf32> to vector<16x64xf32>
    %369 = arith.addf %365, %368 : vector<16x64xf32>
    %370 = arith.mulf %369, %369 : vector<16x64xf32>
    %371 = arith.mulf %369, %370 : vector<16x64xf32>
    %cst_164 = arith.constant 4.471500e-02 : f32
    %372 = vector.broadcast %cst_164 : f32 to vector<16x64xf32>
    %373 = arith.mulf %372, %371 : vector<16x64xf32>
    %374 = arith.addf %369, %373 : vector<16x64xf32>
    %cst_165 = arith.constant 0.797884583 : f32
    %375 = vector.broadcast %cst_165 : f32 to vector<16x64xf32>
    %376 = arith.mulf %375, %374 : vector<16x64xf32>
    %377 = math.tanh %376 : vector<16x64xf32>
    %cst_166 = arith.constant 1.000000e+00 : f32
    %378 = vector.broadcast %cst_166 : f32 to vector<16x64xf32>
    %379 = arith.addf %378, %377 : vector<16x64xf32>
    %cst_167 = arith.constant 5.000000e-01 : f32
    %380 = vector.broadcast %cst_167 : f32 to vector<16x64xf32>
    %381 = arith.mulf %380, %379 : vector<16x64xf32>
    %382 = arith.mulf %369, %381 : vector<16x64xf32>
    %383 = arith.truncf %382 : vector<16x64xf32> to vector<16x64xbf16>
    %c1_168 = arith.constant 1 : index
    %c0_169 = arith.constant 0 : index
    %c0_170 = arith.constant 0 : index
    %384 = vector.load %arg18[%c1_168, %c0_169, %c0_170] : memref<2x64x32xbf16, #tpu.memory_space<vmem>>, vector<1x64x32xbf16>
    %385 = vector.shape_cast %384 : vector<1x64x32xbf16> to vector<64x32xbf16>
    %cst_171 = arith.constant dense<0.000000e+00> : vector<16x32xf32>
    %386 = tpu.matmul %383, %385, %cst_171 {dimension_numbers = #tpu.dot_dimension_numbers<[1], [0], [0], [1], [0, 0, 1, 1], [], []>} : vector<16x64xbf16>, vector<64x32xbf16>, vector<16x32xf32> -> vector<16x32xf32>
    %c1_172 = arith.constant 1 : index
    %c0_173 = arith.constant 0 : index
    %c0_174 = arith.constant 0 : index
    %387 = vector.load %arg19[%c1_172, %c0_173, %c0_174] : memref<2x1x32xf32, #tpu.memory_space<vmem>>, vector<1x1x32xf32>
    %388 = vector.shape_cast %387 : vector<1x1x32xf32> to vector<1x32xf32>
    %389 = vector.broadcast %388 : vector<1x32xf32> to vector<16x32xf32>
    %390 = arith.addf %386, %389 : vector<16x32xf32>
    %391 = arith.addf %361, %390 : vector<16x32xf32>
    %c1_175 = arith.constant 1 : index
    %c0_176 = arith.constant 0 : index
    %c0_177 = arith.constant 0 : index
    %392 = vector.load %arg20[%c1_175, %c0_176, %c0_177] : memref<2x1x32xf32, #tpu.memory_space<vmem>>, vector<1x1x32xf32>
    %393 = vector.shape_cast %392 : vector<1x1x32xf32> to vector<1x32xf32>
    %c1_178 = arith.constant 1 : index
    %c0_179 = arith.constant 0 : index
    %c0_180 = arith.constant 0 : index
    %394 = vector.load %arg21[%c1_178, %c0_179, %c0_180] : memref<2x1x32xf32, #tpu.memory_space<vmem>>, vector<1x1x32xf32>
    %395 = vector.shape_cast %394 : vector<1x1x32xf32> to vector<1x32xf32>
    %cst_181 = arith.constant dense<0.000000e+00> : vector<16xf32>
    %396 = vector.multi_reduction <add>, %391, %cst_181 [1] : vector<16x32xf32> to vector<16xf32>
    %397 = vector.shape_cast %396 : vector<16xf32> to vector<16x1xf32>
    %cst_182 = arith.constant 3.200000e+01 : f32
    %398 = vector.broadcast %cst_182 : f32 to vector<16x1xf32>
    %399 = arith.divf %397, %398 : vector<16x1xf32>
    %400 = vector.broadcast %399 : vector<16x1xf32> to vector<16x32xf32>
    %401 = arith.subf %391, %400 : vector<16x32xf32>
    %402 = arith.mulf %401, %401 : vector<16x32xf32>
    %cst_183 = arith.constant dense<0.000000e+00> : vector<16xf32>
    %403 = vector.multi_reduction <add>, %402, %cst_183 [1] : vector<16x32xf32> to vector<16xf32>
    %404 = vector.shape_cast %403 : vector<16xf32> to vector<16x1xf32>
    %cst_184 = arith.constant 3.200000e+01 : f32
    %405 = vector.broadcast %cst_184 : f32 to vector<16x1xf32>
    %406 = arith.divf %404, %405 : vector<16x1xf32>
    %407 = vector.broadcast %399 : vector<16x1xf32> to vector<16x32xf32>
    %408 = arith.subf %391, %407 : vector<16x32xf32>
    %cst_185 = arith.constant 1.000000e-07 : f32
    %409 = vector.broadcast %cst_185 : f32 to vector<16x1xf32>
    %410 = arith.addf %406, %409 : vector<16x1xf32>
    %411 = math.rsqrt %410 : vector<16x1xf32>
    %412 = vector.broadcast %411 : vector<16x1xf32> to vector<16x32xf32>
    %413 = arith.mulf %408, %412 : vector<16x32xf32>
    %414 = vector.broadcast %393 : vector<1x32xf32> to vector<16x32xf32>
    %415 = arith.mulf %413, %414 : vector<16x32xf32>
    %416 = vector.broadcast %395 : vector<1x32xf32> to vector<16x32xf32>
    %417 = arith.addf %415, %416 : vector<16x32xf32>
    %418 = arith.truncf %417 : vector<16x32xf32> to vector<16x32xbf16>
    %c0_186 = arith.constant 0 : index
    %c0_187 = arith.constant 0 : index
    %419 = vector.load %arg22[%c0_186, %c0_187] : memref<32x512xbf16, #tpu.memory_space<vmem>>, vector<32x512xbf16>
    %cst_188 = arith.constant dense<0.000000e+00> : vector<16x512xf32>
    %420 = tpu.matmul %418, %419, %cst_188 {dimension_numbers = #tpu.dot_dimension_numbers<[1], [0], [0], [1], [0, 0, 1, 1], [], []>} : vector<16x32xbf16>, vector<32x512xbf16>, vector<16x512xf32> -> vector<16x512xf32>
    %c0_189 = arith.constant 0 : index
    %c0_190 = arith.constant 0 : index
    %421 = vector.load %arg23[%c0_189, %c0_190] : memref<1x512xf32, #tpu.memory_space<vmem>>, vector<1x512xf32>
    %422 = vector.broadcast %421 : vector<1x512xf32> to vector<16x512xf32>
    %423 = arith.addf %420, %422 : vector<16x512xf32>
    %cst_191 = arith.constant 0.000000e+00 : f32
    %424 = vector.broadcast %cst_191 : f32 to vector<16x512xf32>
    %425 = arith.maximumf %423, %424 : vector<16x512xf32>
    %426 = arith.truncf %425 : vector<16x512xf32> to vector<16x512xbf16>
    %c0_192 = arith.constant 0 : index
    %c0_193 = arith.constant 0 : index
    %427 = vector.load %arg24[%c0_192, %c0_193] : memref<512x128xbf16, #tpu.memory_space<vmem>>, vector<512x128xbf16>
    %cst_194 = arith.constant dense<0.000000e+00> : vector<16x128xf32>
    %428 = tpu.matmul %426, %427, %cst_194 {dimension_numbers = #tpu.dot_dimension_numbers<[1], [0], [0], [1], [0, 0, 1, 1], [], []>} : vector<16x512xbf16>, vector<512x128xbf16>, vector<16x128xf32> -> vector<16x128xf32>
    %c0_195 = arith.constant 0 : index
    %c0_196 = arith.constant 0 : index
    %429 = vector.load %arg25[%c0_195, %c0_196] : memref<1x128xf32, #tpu.memory_space<vmem>>, vector<1x128xf32>
    %430 = vector.broadcast %429 : vector<1x128xf32> to vector<16x128xf32>
    %431 = arith.addf %428, %430 : vector<16x128xf32>
    %c0_197 = arith.constant 0 : index
    %c0_198 = arith.constant 0 : index
    %432 = vector.load %arg26[%c0_197, %c0_198] : memref<16x128xf32, #tpu.memory_space<vmem>>, vector<16x128xf32>
    tpu.vector_store %arg26[%c0_197, %c0_198], %431 {strides = array<i32>} : memref<16x128xf32, #tpu.memory_space<vmem>>, vector<16x128xf32>,
    return
  }
}

</mosaic_0001>

<bundles_post_ra>
// kernel: tpu_custom_call.1
= control target key start
LH: loop header
LB: loop body
LE: loop exit
PB: predicated region body
PF: predicated region fallthrough
CT: control target
= control target key end

     0   :  { %s4999_s0 = inlined_call_operand.vmem [shape: s32[16,1], index: 0, kind: input, shape index: {}]   ;;  %s5000_s1 = inlined_call_operand.vmem [shape: s32[2,1,8], index: 1, kind: input, shape index: {}]   ;;  %s5001_s2 = inlined_call_operand.vmem [shape: f32[100,32], index: 2, kind: input, shape index: {}]   ;;  %s5002_s3 = inlined_call_operand.hbm [shape: f32[16,32], index: 3, kind: input, shape index: {}]   ;;  %s5003_s4 = inlined_call_operand.hbm [shape: f32[1,32], index: 4, kind: input, shape index: {}]   ;;  %s5004_s5 = inlined_call_operand.hbm [shape: f32[1,32], index: 5, kind: input, shape index: {}]   ;;  %s5005_s6 = inlined_call_operand.vmem [shape: bf16[2,2,32,16], index: 6, kind: input, shape index: {}]   ;;  %s5006_s7 = inlined_call_operand.vmem [shape: f32[2,2,1,16], index: 7, kind: input, shape index: {}]   ;;  %s5007_s8 = inlined_call_operand.vmem [shape: bf16[2,2,32,16], index: 8, kind: input, shape index: {}]   ;;  %s5008_s9 = inlined_call_operand.vmem [shape: f32[2,2,1,16], index: 9, kind: input, shape index: {}]   ;;  %s5009_s10 = inlined_call_operand.vmem [shape: bf16[2,2,32,16], index: 10, kind: input, shape index: {}]   ;;  %s5010_s11 = inlined_call_operand.vmem [shape: f32[2,2,1,16], index: 11, kind: input, shape index: {}]   ;;  %s5011_s12 = inlined_call_operand.vmem [shape: bf16[2,32,32], index: 12, kind: input, shape index: {}]   ;;  %s5012_s13 = inlined_call_operand.vmem [shape: f32[2,1,32], index: 13, kind: input, shape index: {}]   ;;  %s5013_s14 = inlined_call_operand.vmem [shape: f32[2,1,32], index: 14, kind: input, shape index: {}]   ;;  %s5014_s15 = inlined_call_operand.vmem [shape: f32[2,1,32], index: 15, kind: input, shape index: {}]   ;;  %s5015_s16 = inlined_call_operand.vmem [shape: bf16[2,32,64], index: 16, kind: input, shape index: {}]   ;;  %s5016_s17 = inlined_call_operand.vmem [shape: f32[2,1,64], index: 17, kind: input, shape index: {}]   ;;  %s5017_s18 = inlined_call_operand.vmem [shape: bf16[2,64,32], index: 18, kind: input, shape index: {}]   ;;  %s5018_s19 = inlined_call_operand.vmem [shape: f32[2,1,32], index: 19, kind: input, shape index: {}]   ;;  %s5019_s20 = inlined_call_operand.vmem [shape: f32[2,1,32], index: 20, kind: input, shape index: {}]   ;;  %s5020_s21 = inlined_call_operand.vmem [shape: f32[2,1,32], index: 21, kind: input, shape index: {}]   ;;  %s5021_s22 = inlined_call_operand.vmem [shape: bf16[32,512], index: 22, kind: input, shape index: {}]   ;;  %s5022_s23 = inlined_call_operand.vmem [shape: f32[1,512], index: 23, kind: input, shape index: {}]   ;;  %s5023_s24 = inlined_call_operand.vmem [shape: bf16[512,128], index: 24, kind: input, shape index: {}]   ;;  %s5024_s25 = inlined_call_operand.vmem [shape: f32[1,128], index: 25, kind: input, shape index: {}]   ;;  %s5025_s26 = inlined_call_operand.hbm [shape: f32[16,128], index: 26, kind: output, shape index: {}]  }
   0x1   :  { %5038 = sst [smem:[#allocation12_spill]] %s4999_s0 }
   0x2   :  { %5039 = sst [smem:[#allocation13_spill]] %s5000_s1 }
   0x3   :  { %5040 = sst [smem:[#allocation14_spill]] %s5001_s2 }
   0x4   :  { %5041 = sst [smem:[#allocation15_spill]] %s5002_s3 }
   0x5   :  { %5042 = sst [smem:[#allocation16_spill]] %s5003_s4 }
   0x6   :  { %5043 = sst [smem:[#allocation17_spill]] %s5004_s5 }
   0x7   :  { %5044 = sst [smem:[#allocation18_spill]] %s5005_s6 }
   0x8   :  { %5045 = sst [smem:[#allocation19_spill]] %s5006_s7 }
   0x9   :  { %5046 = sst [smem:[#allocation20_spill]] %s5007_s8 }
   0xa   :  { %5047 = sst [smem:[#allocation21_spill]] %s5008_s9 }
   0xb   :  { %5048 = sst [smem:[#allocation22_spill]] %s5009_s10 }
   0xc   :  { %5049 = sst [smem:[#allocation23_spill]] %s5024_s25 }
   0xd   :  { %5050 = sst [smem:[#allocation24_spill]] %s5025_s26 }
   0xe   :  { %31 = vsyncpa [#allocation3], 0 }
   0xf   :  { %32 = vsyncpa [#allocation6], 0 }
  0x10   :  { %33 = vsyncpa [#allocation4], 0  ;;  %s4133_s27 = smov [#allocation5]   ;;  %s4134_s7 = smov [#allocation2]  }
  0x11   :  { %s58_s3 = sshll.u32 %s4133_s27, 4  ;;  %s45_s28 = sshll.u32 %s4134_s7, 4  ;;  %s59_s3 = int_to_ptr.vmem [resolvable:$true] %s58_s3  ;;  %s4277_s28 = int_to_ptr.vmem [resolvable:$true] %s45_s28 }
  0x12   :  { %s5051_s29 = sld [smem:[#allocation16_spill]] }
  0x18   :  { %s4039_s0 = scalar_lea.hbm %s5051_s29, 16 }
  0x19   :  { %p4040_p0 = scmp.ne.s32.totalorder %s5051_s29, %s4039_s0  ;;  %p4043_p1 = scmp.lt.u32.totalorder %s4039_s0, %s5051_s29 }
  0x1b   :  { %p4045_p2 = pnand %p4043_p1, %p4040_p0 }
  0x1d   :  { %4048 = shalt.err (!%p4045_p2)
}
  0x1e   :  { %s4049_s10 = scalar_lea.vmem %s59_s3, 16  ;;  %s4053_s6 = scalar_lea.vmem %s59_s3, 32 }
  0x1f   :  { %p4050_p3 = scmp.ne.s32.totalorder %s59_s3, %s4049_s10  ;;  %p4054_p4 = scmp.lt.s32.totalorder %s59_s3, %s59_s3 }
  0x20   :  { %p4055_p5 = scmp.lt.s32.totalorder %s4053_s6, %s4049_s10 }
  0x22   :  { %p4056_p6 = por %p4055_p5, %p4054_p4 }
  0x24   :  { %p4057_p7 = pnand %p4056_p6, %p4050_p3 }
  0x26   :  { %4060 = shalt.err (!%p4057_p7)
}
  0x27   :  { %61 = dma.hbm_to_vmem [thread:$0]  %s5051_s29, 16, %s59_s3, [#allocation6]  }
  0x28   :  { %s5052_s4 = sld [smem:[#allocation15_spill]] }
  0x2e   :  { %s4061_s9 = scalar_lea.hbm %s5052_s4, 256 }
  0x2f   :  { %p4062_p8 = scmp.ne.s32.totalorder %s5052_s4, %s4061_s9  ;;  %p4065_p9 = scmp.lt.u32.totalorder %s4061_s9, %s5052_s4 }
  0x31   :  { %p4067_p10 = pnand %p4065_p9, %p4062_p8 }
  0x33   :  { %4070 = shalt.err (!%p4067_p10)
}
  0x34   :  { %s4071_s10 = scalar_lea.vmem %s4277_s28, 256  ;;  %p4076_p12 = scmp.lt.s32.totalorder %s4277_s28, %s4277_s28 }
  0x35   :  { %p4072_p11 = scmp.ne.s32.totalorder %s4277_s28, %s4071_s10  ;;  %p4077_p13 = scmp.lt.s32.totalorder %s4071_s10, %s4071_s10 }
  0x37   :  { %p4078_p0 = por %p4077_p13, %p4076_p12 }
  0x39   :  { %p4079_p1 = pnand %p4078_p0, %p4072_p11 }
  0x3b   :  { %4082 = shalt.err (!%p4079_p1)
}
  0x3c   :  { %s4135_s3 = smov 128   ;;  %s4136_s29 = smov 8  }
  0x3d   :  { %51 = dma.hbm_to_vmem [thread:$0]  %s5052_s4, 256, %s4277_s28, [#allocation3], %s4135_s3, %s4135_s3, %s4136_s29  }
  0x3e   :  { %s4137_s27 = smov [#allocation7]   ;;  %s5053_s30 = sld [smem:[#allocation17_spill]] }
  0x3f   :  { %s68_s7 = sshll.u32 %s4137_s27, 4  ;;  %s69_s7 = int_to_ptr.vmem [resolvable:$true] %s68_s7 }
  0x44   :  { %s4083_s0 = scalar_lea.hbm %s5053_s30, 16 }
  0x45   :  { %p4084_p2 = scmp.ne.s32.totalorder %s5053_s30, %s4083_s0  ;;  %p4087_p3 = scmp.lt.u32.totalorder %s4083_s0, %s5053_s30 }
  0x47   :  { %p4089_p4 = pnand %p4087_p3, %p4084_p2 }
  0x49   :  { %4092 = shalt.err (!%p4089_p4)
}
  0x4a   :  { %s4093_s25 = scalar_lea.vmem %s69_s7, 16  ;;  %s4097_s28 = scalar_lea.vmem %s69_s7, 32 }
  0x4b   :  { %p4094_p5 = scmp.ne.s32.totalorder %s69_s7, %s4093_s25  ;;  %p4098_p6 = scmp.lt.s32.totalorder %s69_s7, %s69_s7 }
  0x4c   :  { %p4099_p7 = scmp.lt.s32.totalorder %s4097_s28, %s4093_s25 }
  0x4e   :  { %p4100_p8 = por %p4099_p7, %p4098_p6 }
  0x50   :  { %p4101_p9 = pnand %p4100_p8, %p4094_p5 }
  0x52   :  { %4104 = shalt.err (!%p4101_p9)
}
  0x53   :  { %71 = dma.hbm_to_vmem [thread:$0]  %s5053_s30, 16, %s69_s7, [#allocation6]  }
  0x54   :  { %4127 = dma.done.wait [#allocation3], 256  }
  0x55   :  { %4128 = vsyncadd [#allocation3], 4294967040 }
  0x56   :  { %4129 = dma.done.wait [#allocation6], 32  }
  0x57   :  { %4130 = vsyncadd [#allocation6], 4294967264  ;;  %v4138_v0 = vmov 0   ;;  %s5054_s27 = sld [smem:[#allocation12_spill]]  ;;  %s5055_s9 = sld [smem:[#allocation14_spill]]  ;;  %v4139_v9 = vmov 0.0   ;;  %v124_v23 = vlaneseq }
  0x58   :  { %3894 = vset.pattern.permute.xlu0 %v4138_v0  ;;  %3605 = vmatprep.subr.bf16.mxu1 %v4139_v9  ;;  %vm158_vm0 = vcmask 1043456   ;;  %vm151_vm1 = vcmask 818176   ;;  %v237_v29 = vld [vmem:[#allocation2] sm:$0xff]  ;;  %vm242_vm4 = vcmask 261120   ;;  %s5056_s0 = sld [smem:[#allocation18_spill]]  ;;  %vm4140_vm5 = vmmov 0  }
  0x59   :  { %v125_v24 = vand.u32 127, %v124_v23  ;;  %3609 = vmatprep.mubr.msk.bf16.mxu1 %vm4140_vm5, %v4139_v9  ;;  %v3225_v56 = vld [vmem:[#allocation5] ss:$0 sm:$0xff]  ;;  %v3226_v60 = vld [vmem:[#allocation7] ss:$0 sm:$0xff]  ;;  %s5057_s5 = sld [smem:[#allocation20_spill]] }
  0x5a   :  { %s5058_s26 = sld [smem:[#allocation22_spill]]  ;;  %vm526_vm6 = vcmask 130048   ;;  %s5060_s30 = sld [smem:[#allocation19_spill]]  ;;  %vm623_vm7 = vcmask 64512   ;;  %vm1397_vm8 = vcmask 523264  }
  0x5b   :  { %s5061_s1 = sld [smem:[#allocation13_spill]] }
  0x5d   :  { %v122_v1 = vld [vmem:[%s5054_s27] sm:$0xff]  ;;  %v139_v3 = vld [vmem:[%s5055_s9 + $0x8] sm:$0xff]  ;;  %v140_v4 = vld [vmem:[%s5055_s9 + $0x10] sm:$0xff] }
  0x5e   :  { %v138_v2 = vld [vmem:[%s5055_s9] sm:$0xff]  ;;  %127 = vperm.xlu0 %3894, %v122_v1   ;;  %v141_v5 = vld [vmem:[%s5055_s9 + $0x18] sm:$0xff]  ;;  %v123_v6 = vld [vmem:[%s5054_s27 + $0x8] sm:$0xff]  ;;  %s5059_s27 = sld [smem:[#allocation21_spill]] }
  0x5f   :  { %v3861_v7 = vpack.c.bf16 %v139_v3, %v138_v2  ;;  %v3865_v8 = vpack.c.bf16 %v141_v5, %v140_v4  ;;  %v142_v10 = vld [vmem:[%s5055_s9 + $0x20] sm:$0xff]  ;;  %v143_v11 = vld [vmem:[%s5055_s9 + $0x28] sm:$0xff]  ;;  %v144_v12 = vld [vmem:[%s5055_s9 + $0x30] sm:$0xff] }
  0x60   :  { %v145_v13 = vld [vmem:[%s5055_s9 + $0x38] sm:$0xff]  ;;  %v3869_v14 = vpack.c.bf16 %v143_v11, %v142_v10  ;;  %v146_v15 = vld [vmem:[%s5055_s9 + $0x40] sm:$0xff]  ;;  %v147_v16 = vld [vmem:[%s5055_s9 + $0x48] sm:$0xff] }
  0x61   :  { %3862 = vmatprep.subr.bf16.mxu0 %v3861_v7  ;;  %v3873_v17 = vpack.c.bf16 %v145_v13, %v144_v12  ;;  %v148_v18 = vld [vmem:[%s5055_s9 + $0x50] sm:$0xff]  ;;  %v149_v19 = vld [vmem:[%s5055_s9 + $0x58] sm:$0xff]  ;;  %v3877_v20 = vpack.c.bf16 %v147_v16, %v146_v15  ;;  %v150_v22 = vld [vmem:[%s5055_s9 + $0x60] sm:$0xf] }
  0x62   :  { %130 = vperm.xlu0 %3894, %v123_v6   ;;  %3864 = vmatpush3.bf16.msra.mxu0 %v3861_v7  ;;  %v3881_v21 = vpack.c.bf16 %v149_v19, %v148_v18  ;;  %v3895_v46 = vld [vmem:[%s5056_s0] sm:$0xff]   ;;  %v3896_v47 = vld [vmem:[%s5056_s0 + $0x8] sm:$0xff]  }
  0x63   :  { %3866 = vmatprep.subr.bf16.mxu0 %v3865_v8  ;;  %3606 = vmatpush3.bf16.msra.mxu1 %v3895_v46  ;;  %v3897_v1 = vld [vmem:[%s5057_s5] sm:$0xff]   ;;  %v3898_v3 = vld [vmem:[%s5057_s5 + $0x8] sm:$0xff]  }
  0x64   :  { %3607 = vmatprep.subr.bf16.mxu1 %v4139_v9  ;;  %v3899_v4 = vld [vmem:[%s5058_s26] sm:$0xff]   ;;  %v3900_v5 = vld [vmem:[%s5058_s26 + $0x8] sm:$0xff]  }
  0x65   :  { %v3231_v11 = vld [vmem:[%s5059_s27] ss:$0 sm:$0xff] }
  0x66   :  { %3868 = vmatpush3.bf16.msra.mxu0 %v3865_v8  ;;  %v3227_v19 = vld [vmem:[%s5060_s30] ss:$0 sm:$0xff] }
  0x67   :  { %3870 = vmatprep.subr.bf16.mxu0 %v3869_v14  ;;  %3608 = vmatpush3.bf16.msra.mxu1 %v3896_v47 }
  0x68   :  { %3613 = vmatprep.subr.bf16.mxu1 %v4139_v9 }
  0x6a   :  { %3872 = vmatpush3.bf16.msra.mxu0 %v3869_v14 }
  0x6b   :  { %3874 = vmatprep.subr.bf16.mxu0 %v3873_v17 }
  0x6e   :  { %3876 = vmatpush3.bf16.msra.mxu0 %v3873_v17 }
  0x6f   :  { %3878 = vmatprep.subr.bf16.mxu0 %v3877_v20 }
  0x72   :  { %3880 = vmatpush3.bf16.msra.mxu0 %v3877_v20 }
  0x73   :  { %3882 = vmatprep.subr.bf16.mxu0 %v3881_v21 }
  0x76   :  { %3884 = vmatpush3.bf16.msra.mxu0 %v3881_v21 }
  0x77   :  { %3600 = vmatprep.subr.msk.mxu0 %vm158_vm0, %v150_v22 }
  0x7a   :  { %3601 = vmatpush3.msk.msra.mxu0 %vm158_vm0, %v150_v22  ;;  %v3235_v22 = vld [vmem:[%s5010_s11] ss:$0 sm:$0xff] }
  0x7b   :  { %3635 = vmatprep.subr.bf16.mxu0 %v4139_v9 }
  0xdd   :  { %v128_v25 = vpop.permute.xlu0 %127 }
  0xde   :  { %vm132_vm2 = vcmp.eq.s32.totalorder %v125_v24, %v128_v25 }
  0xdf   :  { %v3220_v26 = vsel %vm132_vm2, 1.0, %v4139_v9 }
  0xe0   :  { %3602 = vmatprep.mubr.msk.f32.mxu0 %vm151_vm1, %v3220_v26 }
  0xe1   :  { %v131_v27 = vpop.permute.xlu0 %130 }
  0xe2   :  { %vm133_vm3 = vcmp.eq.s32.totalorder %v125_v24, %v131_v27 }
  0xe3   :  { %v3221_v28 = vsel %vm133_vm3, 1.0, %v4139_v9 }
  0xe4   :  { %3603 = vmatmul.mubr.msk.f32.vlgmr.msra.gmra.mrb[0].mxu0 %vm151_vm1, %v3221_v28 }
  0xe5   :  { %3637 = vmatprep.mubr.msk.bf16.mxu0 %vm4140_vm5, %v4139_v9 }
 0x1b7   :  { %v3604_v30 = vpop.f32.mrb[0].mxu0 }
 0x1b8   :  { %v228_v31 = vpop.f32.mrb[1].mxu0  ;;  %v239_v33 = vadd.f32 %v3604_v30, %v237_v29 }
 0x1b9   :  { %v238_v32 = vadd.f32 %v237_v29, %v228_v31 }
 0x1ba   :  { %v246_v35 = vsel %vm242_vm4, %v239_v33, 0.0 }
 0x1bb   :  { %v243_v34 = vsel %vm242_vm4, %v238_v32, 0.0 }
 0x1bc   :  { %244 = vadd.xlane.f32.xlu1 %v243_v34 }
 0x1c0   :  { %247 = vadd.xlane.f32.xlu1 %v246_v35 }
 0x249   :  { %v245_v36 = vpop.xlane.xlu1 %244 }
 0x24a   :  { %v250_v37 = vmul.f32 0.03125, %v245_v36 }
 0x24c   :  { %v252_v38 = vsub.f32 %v238_v32, %v250_v37 }
 0x24d   :  { %v248_v39 = vpop.xlane.xlu1 %247 }
 0x24e   :  { %v251_v40 = vmul.f32 0.03125, %v248_v39  ;;  %v254_v41 = vmul.f32 %v252_v38, %v252_v38  ;;  %v286_v39 = vld [vmem:[%s5061_s1] sm:$0x1] }
 0x250   :  { %v253_v42 = vsub.f32 %v239_v33, %v251_v40  ;;  %v256_v43 = vsel %vm242_vm4, %v254_v41, 0.0  ;;  %v287_v40 = vld [vmem:[%s5061_s1 + $0x1] sm:$0x1]  ;;  %v288_v41 = vcvt.s32.f32 %v286_v39 }
 0x251   :  { %257 = vadd.xlane.f32.xlu0 %v256_v43  ;;  %v4458_v43 = vshrl.u32 %v124_v23, 7 }
 0x252   :  { %v255_v44 = vmul.f32 %v253_v42, %v253_v42 }
 0x253   :  { %v4461_v47 = vsub.s32 0, %v4458_v43 }
 0x254   :  { %v259_v45 = vsel %vm242_vm4, %v255_v44, 0.0  ;;  %v290_v44 = vsub.f32 1.0, %v288_v41 }
 0x255   :  { %260 = vadd.xlane.f32.xlu1 %v259_v45 }
 0x256   :  { %v292_v46 = vmul.f32 -1e+09, %v290_v44 }
 0x2de   :  { %v258_v48 = vpop.xlane.xlu0 %257 }
 0x2df   :  { %v262_v49 = vmul.f32 0.03125, %v258_v48 }
 0x2e1   :  { %v264_v50 = vadd.f32 1e-07, %v262_v49  ;;  %v4464_v49 = vrot.slane %v292_v46, %v4461_v47 }
 0x2e2   :  { %v261_v51 = vpop.xlane.xlu1 %260 }
 0x2e3   :  { %3979 = vrsqrt.f32 %v264_v50  ;;  %v263_v52 = vmul.f32 0.03125, %v261_v51 }
 0x2e5   :  { %v265_v53 = vadd.f32 1e-07, %v263_v52 }
 0x2e7   :  { %3981 = vrsqrt.f32 %v265_v53 }
 0x2ed   :  { %v3980_v54 = vpop.eup %3979 }
 0x2ee   :  { %v268_v55 = vmul.f32 %v3980_v54, %v252_v38 }
 0x2f0   :  { %v276_v58 = vmul.f32 %v3225_v56, %v268_v55 }
 0x2f1   :  { %v3982_v57 = vpop.eup %3981 }
 0x2f2   :  { %v269_v59 = vmul.f32 %v3982_v57, %v253_v42  ;;  %v4392_v62 = vadd.f32 %v3226_v60, %v276_v58  ;;  %v289_v42 = vcvt.s32.f32 %v287_v40 }
 0x2f4   :  { %v277_v61 = vmul.f32 %v3225_v56, %v269_v59  ;;  %v291_v45 = vsub.f32 1.0, %v289_v42 }
 0x2f6   :  { %v4394_v63 = vadd.f32 %v3226_v60, %v277_v61  ;;  %v293_v48 = vmul.f32 -1e+09, %v291_v45  ;;  %v3250_v45 = vld [vmem:[%s5059_s27 + $0x1] ss:$0 sm:$0xff] }
 0x2f8   :  { %v4401_v2 = vpack.c.bf16 %v4394_v63, %v4392_v62  ;;  %v4467_v50 = vrot.slane %v293_v48, %v4461_v47 }
 0x2fa   :  { %3610 = vmatmul.mubr.msk.bf16.vlgmr.msra.gmra.mrb[0].mxu1 %vm242_vm4, %v4401_v2 }
 0x2fb   :  { %3614 = vmatpush3.bf16.msra.mxu1 %v3897_v1  ;;  %3617 = vmatprep.mubr.msk.bf16.mxu1 %vm4140_vm5, %v4139_v9 }
 0x2fc   :  { %3615 = vmatprep.subr.bf16.mxu1 %v4139_v9 }
 0x2ff   :  { %3616 = vmatpush3.bf16.msra.mxu1 %v3898_v3 }
 0x300   :  { %3621 = vmatprep.subr.bf16.mxu1 %v4139_v9 }
 0x302   :  { %3618 = vmatmul.mubr.msk.bf16.vlgmr.msra.gmra.mrb[4].mxu1 %vm242_vm4, %v4401_v2 }
 0x303   :  { %3622 = vmatpush3.bf16.msra.mxu1 %v3899_v4  ;;  %3625 = vmatprep.mubr.msk.bf16.mxu1 %vm4140_vm5, %v4139_v9 }
 0x304   :  { %3623 = vmatprep.subr.bf16.mxu1 %v4139_v9 }
 0x307   :  { %3624 = vmatpush3.bf16.msra.mxu1 %v3900_v5 }
 0x308   :  { %3629 = vmatprep.subr.bf16.mxu1 %v4139_v9 }
 0x30a   :  { %3626 = vmatmul.mubr.msk.bf16.vlgmr.msra.gmra.mrb[8].mxu1 %vm242_vm4, %v4401_v2 }
 0x30b   :  { %3631 = vmatprep.mubr.msk.bf16.mxu1 %vm4140_vm5, %v4139_v9 }
 0x3cd   :  { %v385_v6 = vpop.f32.mrb[0].mxu1 }
 0x3ce   :  { %v3611_v7 = vpop.f32.mrb[1].mxu1  ;;  %v386_v24 = vadd.f32 %v3227_v19, %v385_v6 }
 0x3cf   :  { %v388_v8 = vpop.f32.mrb[2].mxu1 }
 0x3d0   :  { %v3612_v10 = vpop.f32.mrb[3].mxu1  ;;  %v389_v27 = vadd.f32 %v3227_v19, %v388_v8  ;;  %v510_v31 = vpack.c.bf16 %v386_v24, %v386_v24  ;;  %v3905_v19 = vld [vmem:[%s5011_s12] sm:$0xff]  }
 0x3d2   :  { %v511_v35 = vpack.c.bf16 %v389_v27, %v389_v27 }
 0x3d5   :  { %v444_v12 = vpop.f32.mrb[4].mxu1 }
 0x3d6   :  { %v445_v13 = vadd.f32 %v3231_v11, %v444_v12  ;;  %v3619_v14 = vpop.f32.mrb[5].mxu1 }
 0x3d7   :  { %v447_v15 = vpop.f32.mrb[6].mxu1  ;;  %v3901_v14 = vld [vmem:[%s5056_s0 + $0x10] sm:$0xff]  }
 0x3d8   :  { %v512_v16 = vpack.c.bf16 %v445_v13, %v445_v13  ;;  %v448_v17 = vadd.f32 %v3231_v11, %v447_v15  ;;  %v3620_v18 = vpop.f32.mrb[7].mxu1 }
 0x3d9   :  { %v3904_v18 = vld [vmem:[%s5058_s26 + $0x18] sm:$0xff]  }
 0x3da   :  { %v531_v20 = vsel %vm526_vm6, %v512_v16, 0  ;;  %v513_v21 = vpack.c.bf16 %v448_v17, %v448_v17  ;;  %v3902_v16 = vld [vmem:[%s5056_s0 + $0x18] sm:$0xff]   ;;  %v3903_v17 = vld [vmem:[%s5058_s26 + $0x10] sm:$0xff]  }
 0x3db   :  { %3630 = vmatpush3.bf16.xpose.msra.mxu1 %v531_v20 }
 0x3dc   :  { %v577_v25 = vsel %vm526_vm6, %v513_v21, 0  ;;  %3641 = vmatprep.subr.bf16.mxu1 %v4139_v9 }
 0x3dd   :  { %v503_v26 = vpop.f32.mrb[8].mxu1  ;;  %3636 = vmatpush3.bf16.xpose.msra.mxu0 %v577_v25 }
 0x3de   :  { %v504_v28 = vadd.f32 %v3235_v22, %v503_v26  ;;  %v3627_v29 = vpop.f32.mrb[9].mxu1  ;;  %3647 = vmatprep.subr.bf16.mxu0 %v4139_v9  ;;  %v3906_v26 = vld [vmem:[%s5057_s5 + $0x10] sm:$0xff]  }
 0x3df   :  { %v506_v30 = vpop.f32.mrb[10].mxu1 }
 0x3e0   :  { %v636_v32 = vpack.c.bf16 %v504_v28, %v504_v28  ;;  %v507_v33 = vadd.f32 %v3235_v22, %v506_v30  ;;  %v3628_v34 = vpop.f32.mrb[11].mxu1 }
 0x3e2   :  { %v642_v36 = vsel %vm158_vm0, %v636_v32, 0  ;;  %v637_v37 = vpack.c.bf16 %v507_v33, %v507_v33  ;;  %3632 = vmatmul.mubr.msk.bf16.vlgmr.msra.gmra.mrb[12].mxu1 %vm526_vm6, %v510_v31  ;;  %v3907_v31 = vld [vmem:[%s5057_s5 + $0x18] sm:$0xff]  }
 0x3e3   :  { %3642 = vmatpush3.bf16.msra.mxu1 %v642_v36  ;;  %3643 = vmatprep.mubr.msk.bf16.mxu1 %vm4140_vm5, %v4139_v9 }
 0x3e4   :  { %v688_v38 = vsel %vm158_vm0, %v637_v37, 0  ;;  %3638 = vmatmul.mubr.msk.bf16.vlgmr.msra.gmra.mrb[4].mxu0 %vm526_vm6, %v511_v35  ;;  %3653 = vmatprep.subr.bf16.mxu1 %v4139_v9 }
 0x3e5   :  { %3648 = vmatpush3.bf16.msra.mxu0 %v688_v38  ;;  %3649 = vmatprep.mubr.msk.bf16.mxu0 %vm4140_vm5, %v4139_v9 }
 0x3e6   :  { %3659 = vmatprep.subr.bf16.mxu0 %v4139_v9 }
 0x4b5   :  { %v567_v51 = vpop.f32.mrb[12].mxu1 }
 0x4b6   :  { %v568_v52 = vadd.f32 %v567_v51, %v4464_v49  ;;  %v3633_v53 = vpop.f32.mrb[13].mxu1  ;;  %v3254_v51 = vld [vmem:[%s5010_s11 + $0x1] ss:$0 sm:$0xff] }
 0x4b7   :  { %v570_v54 = vpop.f32.mrb[14].mxu1  ;;  %v613_v23 = vpop.f32.mrb[4].mxu0 }
 0x4b8   :  { %v619_v55 = vmul.f32 1.442695, %v568_v52  ;;  %v614_v56 = vadd.f32 %v613_v23, %v4467_v50  ;;  %v3634_v57 = vpop.f32.mrb[15].mxu1  ;;  %v3639_v58 = vpop.f32.mrb[5].mxu0 }
 0x4b9   :  { %v616_v59 = vpop.f32.mrb[6].mxu0 }
 0x4ba   :  { %3983 = vpow2.f32 %v619_v55  ;;  %v621_v60 = vmul.f32 1.442695, %v614_v56  ;;  %v3640_v61 = vpop.f32.mrb[7].mxu0  ;;  %v3246_v55 = vld [vmem:[%s5060_s30 + $0x1] ss:$0 sm:$0xff] }
 0x4bc   :  { %3985 = vpow2.f32 %v621_v60 }
 0x4c4   :  { %v3984_v1 = vpop.eup %3983 }
 0x4c5   :  { %v624_v3 = vsel %vm623_vm7, %v3984_v1, 0.0 }
 0x4c6   :  { %v3986_v4 = vpop.eup %3985  ;;  %625 = vadd.xlane.f32.xlu1 %v624_v3 }
 0x4c7   :  { %v627_v5 = vsel %vm623_vm7, %v3986_v4, 0.0 }
 0x4ca   :  { %628 = vadd.xlane.f32.xlu1 %v627_v5 }
 0x553   :  { %v626_v6 = vpop.xlane.xlu1 %625 }
 0x554   :  { %3987 = vrcp.f32 %v626_v6 }
 0x557   :  { %v629_v7 = vpop.xlane.xlu1 %628 }
 0x558   :  { %3989 = vrcp.f32 %v629_v7 }
 0x55e   :  { %v3988_v8 = vpop.eup %3987 }
 0x55f   :  { %v632_v10 = vmul.f32 %v3988_v8, %v3984_v1 }
 0x561   :  { %v634_v11 = vpack.c.bf16 %v632_v10, %v632_v10 }
 0x562   :  { %v3990_v12 = vpop.eup %3989 }
 0x563   :  { %v633_v13 = vmul.f32 %v3990_v12, %v3986_v4  ;;  %3644 = vmatmul.mubr.msk.bf16.vlgmr.msra.gmra.mrb[16].mxu1 %vm623_vm7, %v634_v11 }
 0x564   :  { %3655 = vmatprep.mubr.msk.bf16.mxu1 %vm4140_vm5, %v4139_v9  ;;  %3654 = vmatpush3.bf16.msra.mxu1 %v3905_v19 }
 0x565   :  { %v635_v15 = vpack.c.bf16 %v633_v13, %v633_v13  ;;  %3667 = vmatprep.subr.bf16.mxu1 %v4139_v9 }
 0x567   :  { %3650 = vmatmul.mubr.msk.bf16.vlgmr.msra.gmra.mrb[8].mxu0 %vm623_vm7, %v635_v15 }
 0x568   :  { %3660 = vmatpush3.bf16.msra.mxu0 %v3901_v14  ;;  %3663 = vmatprep.mubr.msk.bf16.mxu0 %vm4140_vm5, %v4139_v9 }
 0x569   :  { %3661 = vmatprep.subr.bf16.mxu0 %v4139_v9 }
 0x56c   :  { %3662 = vmatpush3.bf16.msra.mxu0 %v3902_v16 }
 0x56d   :  { %3675 = vmatprep.subr.bf16.mxu0 %v4139_v9 }
 0x56f   :  { %3664 = vmatmul.mubr.msk.bf16.vlgmr.msra.gmra.mrb[12].mxu0 %vm242_vm4, %v4401_v2 }
 0x570   :  { %3676 = vmatpush3.bf16.msra.mxu0 %v3903_v17  ;;  %3679 = vmatprep.mubr.msk.bf16.mxu0 %vm4140_vm5, %v4139_v9 }
 0x571   :  { %3677 = vmatprep.subr.bf16.mxu0 %v4139_v9 }
 0x574   :  { %3678 = vmatpush3.bf16.msra.mxu0 %v3904_v18 }
 0x575   :  { %3689 = vmatprep.subr.bf16.mxu0 %v4139_v9 }
 0x577   :  { %3680 = vmatmul.mubr.msk.bf16.vlgmr.msra.gmra.mrb[16].mxu0 %vm242_vm4, %v4401_v2 }
 0x578   :  { %3691 = vmatprep.mubr.msk.bf16.mxu0 %vm4140_vm5, %v4139_v9 }
 0x636   :  { %v678_v20 = vpop.f32.mrb[16].mxu1 }
 0x637   :  { %v3645_v21 = vpop.f32.mrb[17].mxu1 }
 0x638   :  { %v681_v22 = vpop.f32.mrb[18].mxu1 }
 0x639   :  { %v3646_v24 = vpop.f32.mrb[19].mxu1 }
 0x63a   :  { %v724_v25 = vpop.f32.mrb[8].mxu0 }
 0x63b   :  { %v730_v27 = vpack.c.bf16 %v724_v25, %v678_v20  ;;  %v3651_v28 = vpop.f32.mrb[9].mxu0 }
 0x63c   :  { %v727_v29 = vpop.f32.mrb[10].mxu0 }
 0x63d   :  { %v3652_v30 = vpop.f32.mrb[11].mxu0  ;;  %3656 = vmatmul.mubr.msk.bf16.vlgmr.msra.gmra.mrb[20].mxu1 %vm526_vm6, %v730_v27 }
 0x63e   :  { %3668 = vmatpush3.bf16.msra.mxu1 %v3906_v26  ;;  %3671 = vmatprep.mubr.msk.bf16.mxu1 %vm4140_vm5, %v4139_v9 }
 0x63f   :  { %3669 = vmatprep.subr.bf16.mxu1 %v4139_v9 }
 0x642   :  { %v841_v32 = vpop.f32.mrb[12].mxu0  ;;  %3670 = vmatpush3.bf16.msra.mxu1 %v3907_v31 }
 0x643   :  { %v3665_v33 = vpop.f32.mrb[13].mxu0  ;;  %3683 = vmatprep.subr.bf16.mxu1 %v4139_v9  ;;  %v842_v59 = vadd.f32 %v3246_v55, %v841_v32 }
 0x644   :  { %v844_v34 = vpop.f32.mrb[14].mxu0 }
 0x645   :  { %v3666_v35 = vpop.f32.mrb[15].mxu0  ;;  %3672 = vmatmul.mubr.msk.bf16.vlgmr.msra.gmra.mrb[24].mxu1 %vm242_vm4, %v4401_v2  ;;  %v845_v1 = vadd.f32 %v3246_v55, %v844_v34  ;;  %v966_v4 = vpack.c.bf16 %v842_v59, %v842_v59 }
 0x646   :  { %3685 = vmatprep.mubr.msk.bf16.mxu1 %vm4140_vm5, %v4139_v9  ;;  %v3908_v35 = vld [vmem:[%s5011_s12 + $0x8] sm:$0xff]  }
 0x647   :  { %v967_v6 = vpack.c.bf16 %v845_v1, %v845_v1 }
 0x64a   :  { %v959_v36 = vpop.f32.mrb[16].mxu0 }
 0x64b   :  { %v3681_v37 = vpop.f32.mrb[17].mxu0  ;;  %v960_v56 = vadd.f32 %v3254_v51, %v959_v36 }
 0x64c   :  { %v962_v38 = vpop.f32.mrb[18].mxu0 }
 0x64d   :  { %v3682_v39 = vpop.f32.mrb[19].mxu0  ;;  %v963_v60 = vadd.f32 %v3254_v51, %v962_v38  ;;  %v1078_v3 = vpack.c.bf16 %v960_v56, %v960_v56 }
 0x64f   :  { %v1079_v5 = vpack.c.bf16 %v963_v60, %v963_v60  ;;  %v1084_v7 = vsel %vm158_vm0, %v1078_v3, 0 }
 0x651   :  { %v1130_v8 = vsel %vm158_vm0, %v1079_v5, 0 }
 0x710   :  { %v4522_v40 = vpop.f32.mrb[20].mxu1 }
 0x711   :  { %v3657_v41 = vpop.f32.mrb[21].mxu1 }
 0x712   :  { %v4524_v42 = vpop.f32.mrb[22].mxu1 }
 0x713   :  { %v3658_v44 = vpop.f32.mrb[23].mxu1 }
 0x718   :  { %v900_v46 = vpop.f32.mrb[24].mxu1 }
 0x719   :  { %v901_v48 = vadd.f32 %v3250_v45, %v900_v46  ;;  %v3673_v2 = vpop.f32.mrb[25].mxu1 }
 0x71a   :  { %v903_v52 = vpop.f32.mrb[26].mxu1  ;;  %v3245_v2 = vld [vmem:[%s5012_s13] ss:$0 sm:$0xff] }
 0x71b   :  { %v968_v53 = vpack.c.bf16 %v901_v48, %v901_v48  ;;  %v904_v54 = vadd.f32 %v3250_v45, %v903_v52  ;;  %v3674_v23 = vpop.f32.mrb[27].mxu1  ;;  %v787_v51 = vadd.f32 %v3245_v2, %v4522_v40 }
 0x71d   :  { %v974_v57 = vsel %vm526_vm6, %v968_v53, 0  ;;  %v969_v58 = vpack.c.bf16 %v904_v54, %v904_v54  ;;  %v788_v53 = vadd.f32 %v3245_v2, %v4524_v42 }
 0x71e   :  { %3684 = vmatpush3.bf16.xpose.msra.mxu1 %v974_v57 }
 0x71f   :  { %v1020_v61 = vsel %vm526_vm6, %v969_v58, 0  ;;  %3695 = vmatprep.subr.bf16.mxu1 %v4139_v9 }
 0x720   :  { %3690 = vmatpush3.bf16.xpose.msra.mxu0 %v1020_v61 }
 0x721   :  { %3701 = vmatprep.subr.bf16.mxu0 %v4139_v9 }
 0x725   :  { %3686 = vmatmul.mubr.msk.bf16.vlgmr.msra.gmra.mrb[28].mxu1 %vm526_vm6, %v966_v4 }
 0x726   :  { %3696 = vmatpush3.bf16.msra.mxu1 %v1084_v7  ;;  %3697 = vmatprep.mubr.msk.bf16.mxu1 %vm4140_vm5, %v4139_v9 }
 0x727   :  { %3692 = vmatmul.mubr.msk.bf16.vlgmr.msra.gmra.mrb[20].mxu0 %vm526_vm6, %v967_v6  ;;  %3707 = vmatprep.subr.bf16.mxu1 %v4139_v9 }
 0x728   :  { %3702 = vmatpush3.bf16.msra.mxu0 %v1130_v8  ;;  %3703 = vmatprep.mubr.msk.bf16.mxu0 %vm4140_vm5, %v4139_v9 }
 0x729   :  { %3713 = vmatprep.subr.bf16.mxu0 %v4139_v9 }
 0x7f8   :  { %v1010_v10 = vpop.f32.mrb[28].mxu1 }
 0x7f9   :  { %v1011_v11 = vadd.f32 %v1010_v10, %v4464_v49  ;;  %v3687_v12 = vpop.f32.mrb[29].mxu1  ;;  %v3910_v10 = vld [vmem:[%s5015_s16 + $0x8] sm:$0xff]  }
 0x7fa   :  { %v1013_v13 = vpop.f32.mrb[30].mxu1  ;;  %v1056_v14 = vpop.f32.mrb[20].mxu0 }
 0x7fb   :  { %v1062_v15 = vmul.f32 1.442695, %v1011_v11  ;;  %v1057_v16 = vadd.f32 %v1056_v14, %v4467_v50  ;;  %v3688_v17 = vpop.f32.mrb[31].mxu1  ;;  %v3693_v18 = vpop.f32.mrb[21].mxu0 }
 0x7fc   :  { %v1059_v19 = vpop.f32.mrb[22].mxu0 }
 0x7fd   :  { %3991 = vpow2.f32 %v1062_v15  ;;  %v1064_v20 = vmul.f32 1.442695, %v1057_v16  ;;  %v3694_v21 = vpop.f32.mrb[23].mxu0  ;;  %v3264_v19 = vld [vmem:[%s5013_s14] ss:$0 sm:$0xff] }
 0x7ff   :  { %3993 = vpow2.f32 %v1064_v20 }
 0x807   :  { %v3992_v22 = vpop.eup %3991 }
 0x808   :  { %v1066_v24 = vsel %vm623_vm7, %v3992_v22, 0.0 }
 0x809   :  { %v3994_v25 = vpop.eup %3993  ;;  %1067 = vadd.xlane.f32.xlu1 %v1066_v24  ;;  %v3265_v24 = vld [vmem:[%s5014_s15] ss:$0 sm:$0xff] }
 0x80a   :  { %v1069_v26 = vsel %vm623_vm7, %v3994_v25, 0.0 }
 0x80d   :  { %1070 = vadd.xlane.f32.xlu1 %v1069_v26 }
 0x896   :  { %v1068_v27 = vpop.xlane.xlu1 %1067 }
 0x897   :  { %3995 = vrcp.f32 %v1068_v27 }
 0x89a   :  { %v1071_v28 = vpop.xlane.xlu1 %1070 }
 0x89b   :  { %3997 = vrcp.f32 %v1071_v28 }
 0x8a1   :  { %v3996_v29 = vpop.eup %3995 }
 0x8a2   :  { %v1074_v30 = vmul.f32 %v3996_v29, %v3992_v22  ;;  %v3911_v29 = vld [vmem:[%s5017_s18] sm:$0xff]  }
 0x8a4   :  { %v1076_v31 = vpack.c.bf16 %v1074_v30, %v1074_v30  ;;  %v3912_v30 = vld [vmem:[%s5017_s18 + $0x8] sm:$0xff]  }
 0x8a5   :  { %v3998_v32 = vpop.eup %3997 }
 0x8a6   :  { %v1075_v33 = vmul.f32 %v3998_v32, %v3994_v25  ;;  %3698 = vmatmul.mubr.msk.bf16.vlgmr.msra.gmra.mrb[32].mxu1 %vm623_vm7, %v1076_v31  ;;  %v3913_v31 = vld [vmem:[%s5017_s18 + $0x10] sm:$0xff]   ;;  %v3914_v32 = vld [vmem:[%s5017_s18 + $0x18] sm:$0xff]  }
 0x8a7   :  { %3709 = vmatprep.mubr.msk.bf16.mxu1 %vm4140_vm5, %v4139_v9  ;;  %3708 = vmatpush3.bf16.msra.mxu1 %v3908_v35 }
 0x8a8   :  { %v1077_v34 = vpack.c.bf16 %v1075_v33, %v1075_v33  ;;  %3721 = vmatprep.subr.bf16.mxu1 %v4139_v9  ;;  %v3266_v33 = vld [vmem:[%s5016_s17] ss:$0 sm:$0xff] }
 0x8aa   :  { %3704 = vmatmul.mubr.msk.bf16.vlgmr.msra.gmra.mrb[24].mxu0 %vm623_vm7, %v1077_v34 }
 0x8ab   :  { %3717 = vmatprep.mubr.msk.bf16.mxu0 %vm4140_vm5, %v4139_v9 }
 0x979   :  { %v1120_v36 = vpop.f32.mrb[32].mxu1 }
 0x97a   :  { %v3699_v37 = vpop.f32.mrb[33].mxu1 }
 0x97b   :  { %v1123_v38 = vpop.f32.mrb[34].mxu1 }
 0x97c   :  { %v3700_v39 = vpop.f32.mrb[35].mxu1 }
 0x97d   :  { %v1166_v41 = vpop.f32.mrb[24].mxu0 }
 0x97e   :  { %v1172_v44 = vpack.c.bf16 %v1166_v41, %v1120_v36  ;;  %v3705_v45 = vpop.f32.mrb[25].mxu0 }
 0x97f   :  { %v1169_v46 = vpop.f32.mrb[26].mxu0 }
 0x980   :  { %v3706_v48 = vpop.f32.mrb[27].mxu0  ;;  %3710 = vmatmul.mubr.msk.bf16.vlgmr.msra.gmra.mrb[36].mxu1 %vm526_vm6, %v1172_v44 }
 0x981   :  { %3729 = vmatprep.mubr.msk.bf16.mxu1 %vm4140_vm5, %v4139_v9  ;;  %3722 = vmatpush3.bf16.msra.mxu1 %v3911_v29 }
 0x982   :  { %3723 = vmatprep.subr.bf16.mxu1 %v4139_v9 }
 0x985   :  { %3724 = vmatpush3.bf16.msra.mxu1 %v3912_v30 }
 0x986   :  { %3725 = vmatprep.subr.bf16.mxu1 %v4139_v9 }
 0x989   :  { %3726 = vmatpush3.bf16.msra.mxu1 %v3913_v31 }
 0x98a   :  { %3727 = vmatprep.subr.bf16.mxu1 %v4139_v9 }
 0x98d   :  { %3728 = vmatpush3.bf16.msra.mxu1 %v3914_v32 }
 0x98e   :  { %3749 = vmatprep.subr.bf16.mxu1 %v4139_v9 }
 0xa53   :  { %v1216_v52 = vpop.f32.mrb[36].mxu1 }
 0xa54   :  { %v1223_v54 = vadd.f32 %v1216_v52, %v787_v51  ;;  %v3711_v23 = vpop.f32.mrb[37].mxu1 }
 0xa55   :  { %v1219_v55 = vpop.f32.mrb[38].mxu1 }
 0xa56   :  { %v1224_v56 = vadd.f32 %v1219_v55, %v788_v53  ;;  %v3712_v57 = vpop.f32.mrb[39].mxu1  ;;  %v1225_v58 = vadd.f32 %v1223_v54, %v4392_v62 }
 0xa58   :  { %v1229_v59 = vsel %vm242_vm4, %v1225_v58, 0.0  ;;  %v1226_v60 = vadd.f32 %v1224_v56, %v4394_v63  ;;  %v3909_v63 = vld [vmem:[%s5015_s16] sm:$0xff]  }
 0xa59   :  { %1230 = vadd.xlane.f32.xlu1 %v1229_v59  ;;  %3714 = vmatpush3.bf16.msra.mxu0 %v3909_v63 }
 0xa5a   :  { %v1232_v61 = vsel %vm242_vm4, %v1226_v60, 0.0  ;;  %3715 = vmatprep.subr.bf16.mxu0 %v4139_v9 }
 0xa5d   :  { %1233 = vadd.xlane.f32.xlu1 %v1232_v61  ;;  %3716 = vmatpush3.bf16.msra.mxu0 %v3910_v10 }
 0xa5e   :  { %3733 = vmatprep.subr.bf16.mxu0 %v4139_v9 }
 0xae6   :  { %v1231_v1 = vpop.xlane.xlu1 %1230 }
 0xae7   :  { %v1235_v40 = vmul.f32 0.03125, %v1231_v1 }
 0xae9   :  { %v1237_v3 = vsub.f32 %v1225_v58, %v1235_v40  ;;  %v3270_v40 = vld [vmem:[%s5018_s19] ss:$0 sm:$0xff] }
 0xaea   :  { %v1234_v4 = vpop.xlane.xlu1 %1233 }
 0xaeb   :  { %v1236_v42 = vmul.f32 0.03125, %v1234_v4  ;;  %v1239_v5 = vmul.f32 %v1237_v3, %v1237_v3 }
 0xaed   :  { %v1238_v6 = vsub.f32 %v1226_v60, %v1236_v42  ;;  %v1241_v7 = vsel %vm242_vm4, %v1239_v5, 0.0 }
 0xaee   :  { %1242 = vadd.xlane.f32.xlu1 %v1241_v7 }
 0xaef   :  { %v1240_v8 = vmul.f32 %v1238_v6, %v1238_v6 }
 0xaf1   :  { %v1244_v62 = vsel %vm242_vm4, %v1240_v8, 0.0 }
 0xaf2   :  { %1245 = vadd.xlane.f32.xlu0 %v1244_v62 }
 0xb7b   :  { %v1243_v11 = vpop.xlane.xlu1 %1242 }
 0xb7c   :  { %v1247_v12 = vmul.f32 0.03125, %v1243_v11 }
 0xb7e   :  { %v1249_v13 = vadd.f32 1e-07, %v1247_v12 }
 0xb7f   :  { %v1246_v14 = vpop.xlane.xlu0 %1245 }
 0xb80   :  { %3999 = vrsqrt.f32 %v1249_v13  ;;  %v1248_v15 = vmul.f32 0.03125, %v1246_v14 }
 0xb82   :  { %v1250_v16 = vadd.f32 1e-07, %v1248_v15 }
 0xb84   :  { %4001 = vrsqrt.f32 %v1250_v16 }
 0xb8a   :  { %v4000_v17 = vpop.eup %3999 }
 0xb8b   :  { %v1253_v18 = vmul.f32 %v4000_v17, %v1237_v3 }
 0xb8d   :  { %v1261_v21 = vmul.f32 %v3264_v19, %v1253_v18 }
 0xb8e   :  { %v4002_v20 = vpop.eup %4001 }
 0xb8f   :  { %v1254_v22 = vmul.f32 %v4002_v20, %v1238_v6  ;;  %v1269_v26 = vadd.f32 %v3265_v24, %v1261_v21  ;;  %v3915_v21 = vld [vmem:[%s5056_s0 + $0x20] sm:$0xff]  }
 0xb91   :  { %v1262_v25 = vmul.f32 %v3264_v19, %v1254_v22  ;;  %v3916_v22 = vld [vmem:[%s5058_s26 + $0x20] sm:$0xff]  }
 0xb93   :  { %v1270_v27 = vadd.f32 %v3265_v24, %v1262_v25  ;;  %v3917_v24 = vld [vmem:[%s5056_s0 + $0x28] sm:$0xff]  }
 0xb94   :  { %v3918_v25 = vld [vmem:[%s5058_s26 + $0x28] sm:$0xff]  }
 0xb95   :  { %v1271_v28 = vpack.c.bf16 %v1270_v27, %v1269_v26 }
 0xb97   :  { %3718 = vmatmul.mubr.msk.bf16.vlgmr.msra.gmra.mrb[28].mxu0 %vm242_vm4, %v1271_v28 }
 0xb98   :  { %3737 = vmatprep.mubr.msk.bf16.mxu0 %vm4140_vm5, %v4139_v9  ;;  %3734 = vmatpush3.bf16.msra.mxu0 %v3915_v21 }
 0xb99   :  { %3735 = vmatprep.subr.bf16.mxu0 %v4139_v9 }
 0xb9c   :  { %3736 = vmatpush3.bf16.msra.mxu0 %v3917_v24 }
 0xb9d   :  { %3741 = vmatprep.subr.bf16.mxu0 %v4139_v9 }
 0xc6a   :  { %v1332_v34 = vpop.f32.mrb[28].mxu0 }
 0xc6b   :  { %v1333_v35 = vadd.f32 %v3266_v33, %v1332_v34  ;;  %v3719_v36 = vpop.f32.mrb[29].mxu0 }
 0xc6c   :  { %v1335_v37 = vpop.f32.mrb[30].mxu0 }
 0xc6d   :  { %v1339_v38 = vmul.f32 %v1333_v35, %v1333_v35  ;;  %v1336_v39 = vadd.f32 %v3266_v33, %v1335_v37  ;;  %v3720_v41 = vpop.f32.mrb[31].mxu0  ;;  %v3276_v33 = vld [vmem:[%s5019_s20] ss:$0 sm:$0xff] }
 0xc6f   :  { %v1341_v44 = vmul.f32 %v1339_v38, %v1333_v35  ;;  %v1340_v45 = vmul.f32 %v1336_v39, %v1336_v39  ;;  %v3277_v38 = vld [vmem:[%s5020_s21] ss:$0 sm:$0xff] }
 0xc71   :  { %v1343_v46 = vmul.f32 0.044715, %v1341_v44  ;;  %v1342_v48 = vmul.f32 %v1340_v45, %v1336_v39  ;;  %v3919_v45 = vld [vmem:[%s5057_s5 + $0x20] sm:$0xff]  }
 0xc73   :  { %v1345_v2 = vadd.f32 %v1343_v46, %v1333_v35  ;;  %v1344_v51 = vmul.f32 0.044715, %v1342_v48  ;;  %v3920_v48 = vld [vmem:[%s5057_s5 + $0x28] sm:$0xff]  }
 0xc75   :  { %v1347_v52 = vmul.f32 0.7978846, %v1345_v2  ;;  %v1346_v53 = vadd.f32 %v1344_v51, %v1336_v39 }
 0xc77   :  { %4003 = vtanh.f32 %v1347_v52  ;;  %v1348_v54 = vmul.f32 0.7978846, %v1346_v53 }
 0xc79   :  { %4005 = vtanh.f32 %v1348_v54 }
 0xc81   :  { %v4004_v23 = vpop.eup %4003 }
 0xc82   :  { %v1351_v55 = vadd.f32 1.0, %v4004_v23 }
 0xc83   :  { %v4006_v56 = vpop.eup %4005 }
 0xc84   :  { %v1353_v57 = vmul.f32 0.5, %v1351_v55  ;;  %v1352_v58 = vadd.f32 1.0, %v4006_v56 }
 0xc86   :  { %v1354_v59 = vmul.f32 0.5, %v1352_v58  ;;  %v1355_v60 = vmul.f32 %v1353_v57, %v1333_v35  ;;  %v3317_v57 = vld [vmem:[%s5059_s27 + $0x2] ss:$0 sm:$0xff] }
 0xc88   :  { %v1356_v61 = vmul.f32 %v1354_v59, %v1336_v39 }
 0xc8a   :  { %v1357_v1 = vpack.c.bf16 %v1356_v61, %v1355_v60  ;;  %v3321_v61 = vld [vmem:[%s5010_s11 + $0x2] ss:$0 sm:$0xff] }
 0xc8c   :  { %3730 = vmatmul.mubr.msk.bf16.vlgmr.msra.gmra.mrb[40].mxu1 %vm1397_vm8, %v1357_v1 }
 0xc8d   :  { %3753 = vmatprep.mubr.msk.bf16.mxu1 %vm4140_vm5, %v4139_v9  ;;  %3750 = vmatpush3.bf16.msra.mxu1 %v3916_v22 }
 0xc8e   :  { %3751 = vmatprep.subr.bf16.mxu1 %v4139_v9 }
 0xc91   :  { %3752 = vmatpush3.bf16.msra.mxu1 %v3918_v25 }
 0xc92   :  { %3763 = vmatprep.subr.bf16.mxu1 %v4139_v9 }
 0xd5f   :  { %v1435_v3 = vpop.f32.mrb[40].mxu1 }
 0xd60   :  { %v1436_v4 = vadd.f32 %v3270_v40, %v1435_v3  ;;  %v3731_v42 = vpop.f32.mrb[41].mxu1 }
 0xd61   :  { %v1438_v5 = vpop.f32.mrb[42].mxu1  ;;  %v3313_v42 = vld [vmem:[%s5060_s30 + $0x2] ss:$0 sm:$0xff] }
 0xd62   :  { %v1439_v6 = vadd.f32 %v3270_v40, %v1438_v5  ;;  %v3732_v7 = vpop.f32.mrb[43].mxu1  ;;  %v1442_v8 = vadd.f32 %v1436_v4, %v1269_v26 }
 0xd64   :  { %v1446_v62 = vsel %vm242_vm4, %v1442_v8, 0.0  ;;  %v1443_v63 = vadd.f32 %v1439_v6, %v1270_v27 }
 0xd65   :  { %1447 = vadd.xlane.f32.xlu1 %v1446_v62 }
 0xd66   :  { %v1449_v10 = vsel %vm242_vm4, %v1443_v63, 0.0 }
 0xd67   :  { %1450 = vadd.xlane.f32.xlu0 %v1449_v10 }
 0xdf2   :  { %v1448_v11 = vpop.xlane.xlu1 %1447 }
 0xdf3   :  { %v1452_v12 = vmul.f32 0.03125, %v1448_v11 }
 0xdf4   :  { %v1451_v13 = vpop.xlane.xlu0 %1450 }
 0xdf5   :  { %v1454_v14 = vsub.f32 %v1442_v8, %v1452_v12  ;;  %v1453_v15 = vmul.f32 0.03125, %v1451_v13 }
 0xdf7   :  { %v1455_v16 = vsub.f32 %v1443_v63, %v1453_v15  ;;  %v1456_v17 = vmul.f32 %v1454_v14, %v1454_v14 }
 0xdf9   :  { %v1458_v18 = vsel %vm242_vm4, %v1456_v17, 0.0  ;;  %v1457_v19 = vmul.f32 %v1455_v16, %v1455_v16 }
 0xdfa   :  { %1459 = vadd.xlane.f32.xlu1 %v1458_v18 }
 0xdfb   :  { %v1461_v20 = vsel %vm242_vm4, %v1457_v19, 0.0 }
 0xdfc   :  { %1462 = vadd.xlane.f32.xlu0 %v1461_v20 }
 0xe87   :  { %v1460_v26 = vpop.xlane.xlu1 %1459 }
 0xe88   :  { %v1464_v27 = vmul.f32 0.03125, %v1460_v26 }
 0xe89   :  { %v1463_v28 = vpop.xlane.xlu0 %1462 }
 0xe8a   :  { %v1466_v29 = vadd.f32 1e-07, %v1464_v27  ;;  %v1465_v30 = vmul.f32 0.03125, %v1463_v28 }
 0xe8c   :  { %4007 = vrsqrt.f32 %v1466_v29  ;;  %v1467_v31 = vadd.f32 1e-07, %v1465_v30 }
 0xe8e   :  { %4009 = vrsqrt.f32 %v1467_v31 }
 0xe96   :  { %v4008_v32 = vpop.eup %4007 }
 0xe97   :  { %v1470_v34 = vmul.f32 %v4008_v32, %v1454_v14 }
 0xe98   :  { %v4010_v35 = vpop.eup %4009 }
 0xe99   :  { %v1478_v36 = vmul.f32 %v3276_v33, %v1470_v34  ;;  %v1471_v37 = vmul.f32 %v4010_v35, %v1455_v16 }
 0xe9b   :  { %v1479_v39 = vmul.f32 %v3276_v33, %v1471_v37  ;;  %v4645_v41 = vadd.f32 %v3277_v38, %v1478_v36 }
 0xe9d   :  { %v4647_v44 = vadd.f32 %v3277_v38, %v1479_v39  ;;  %v3925_v39 = vld [vmem:[%s5011_s12 + $0x10] sm:$0xff]  }
 0xe9f   :  { %v4654_v46 = vpack.c.bf16 %v4647_v44, %v4645_v41 }
 0xea1   :  { %3738 = vmatmul.mubr.msk.bf16.vlgmr.msra.gmra.mrb[32].mxu0 %vm242_vm4, %v4654_v46  ;;  %3754 = vmatmul.mubr.msk.bf16.vlgmr.msra.gmra.mrb[44].mxu1 %vm242_vm4, %v4654_v46 }
 0xea2   :  { %3742 = vmatpush3.bf16.msra.mxu0 %v3919_v45  ;;  %3745 = vmatprep.mubr.msk.bf16.mxu0 %vm4140_vm5, %v4139_v9 }
 0xea3   :  { %3743 = vmatprep.subr.bf16.mxu0 %v4139_v9  ;;  %3765 = vmatprep.mubr.msk.bf16.mxu1 %vm4140_vm5, %v4139_v9 }
 0xea6   :  { %3744 = vmatpush3.bf16.msra.mxu0 %v3920_v48 }
 0xea7   :  { %3757 = vmatprep.subr.bf16.mxu0 %v4139_v9 }
 0xea9   :  { %3746 = vmatmul.mubr.msk.bf16.vlgmr.msra.gmra.mrb[36].mxu0 %vm242_vm4, %v4654_v46 }
 0xeaa   :  { %3759 = vmatprep.mubr.msk.bf16.mxu0 %vm4140_vm5, %v4139_v9 }
 0xf74   :  { %v1587_v2 = vpop.f32.mrb[32].mxu0  ;;  %v1705_v51 = vpop.f32.mrb[44].mxu1 }
 0xf75   :  { %v3739_v52 = vpop.f32.mrb[33].mxu0  ;;  %v3755_v53 = vpop.f32.mrb[45].mxu1  ;;  %v1706_v5 = vadd.f32 %v3321_v61, %v1705_v51  ;;  %v1588_v8 = vadd.f32 %v3313_v42, %v1587_v2  ;;  %v3921_v2 = vld [vmem:[%s5056_s0 + $0x30] sm:$0xff]  }
 0xf76   :  { %v1590_v54 = vpop.f32.mrb[34].mxu0  ;;  %v1708_v23 = vpop.f32.mrb[46].mxu1  ;;  %v3922_v52 = vld [vmem:[%s5056_s0 + $0x38] sm:$0xff]   ;;  %v3923_v53 = vld [vmem:[%s5058_s26 + $0x30] sm:$0xff]   ;;  %s5062_s0 = sld [smem:[#allocation23_spill]] }
 0xf77   :  { %v3740_v55 = vpop.f32.mrb[35].mxu0  ;;  %v3756_v56 = vpop.f32.mrb[47].mxu1  ;;  %v1709_v62 = vadd.f32 %v3321_v61, %v1708_v23  ;;  %v1824_v10 = vpack.c.bf16 %v1706_v5, %v1706_v5  ;;  %v1591_v11 = vadd.f32 %v3313_v42, %v1590_v54  ;;  %v1712_v12 = vpack.c.bf16 %v1588_v8, %v1588_v8  ;;  %v3924_v54 = vld [vmem:[%s5058_s26 + $0x38] sm:$0xff]   ;;  %s4141_s26 = smov [#allocation8]  }
 0xf78   :  { %s3207_s6 = sshll.u32 %s4141_s26, 4  ;;  %s3208_s6 = int_to_ptr.vmem [resolvable:$true] %s3207_s6 }
 0xf79   :  { %v1825_v13 = vpack.c.bf16 %v1709_v62, %v1709_v62  ;;  %v1830_v14 = vsel %vm158_vm0, %v1824_v10, 0  ;;  %v1713_v15 = vpack.c.bf16 %v1591_v11, %v1591_v11  ;;  %p4110_p11 = scmp.lt.s32.totalorder %s3208_s6, %s3208_s6 }
 0xf7b   :  { %v1876_v16 = vsel %vm158_vm0, %v1825_v13, 0 }
 0xf7c   :  { %v1646_v58 = vpop.f32.mrb[36].mxu0 }
 0xf7d   :  { %v1647_v59 = vadd.f32 %v3317_v57, %v1646_v58  ;;  %v3747_v60 = vpop.f32.mrb[37].mxu0  ;;  %v3926_v58 = vld [vmem:[%s5057_s5 + $0x30] sm:$0xff]  }
 0xf7e   :  { %v1649_v1 = vpop.f32.mrb[38].mxu0 }
 0xf7f   :  { %v1714_v40 = vpack.c.bf16 %v1647_v59, %v1647_v59  ;;  %v1650_v3 = vadd.f32 %v3317_v57, %v1649_v1  ;;  %v3748_v4 = vpop.f32.mrb[39].mxu0 }
 0xf81   :  { %v1720_v6 = vsel %vm526_vm6, %v1714_v40, 0  ;;  %v1715_v7 = vpack.c.bf16 %v1650_v3, %v1650_v3  ;;  %v3927_v3 = vld [vmem:[%s5057_s5 + $0x38] sm:$0xff]  }
 0xf82   :  { %3758 = vmatpush3.bf16.xpose.msra.mxu0 %v1720_v6 }
 0xf83   :  { %v1766_v63 = vsel %vm526_vm6, %v1715_v7, 0  ;;  %3769 = vmatprep.subr.bf16.mxu0 %v4139_v9 }
 0xf84   :  { %3764 = vmatpush3.bf16.xpose.msra.mxu1 %v1766_v63 }
 0xf85   :  { %3775 = vmatprep.subr.bf16.mxu1 %v4139_v9 }
 0xf89   :  { %3760 = vmatmul.mubr.msk.bf16.vlgmr.msra.gmra.mrb[40].mxu0 %vm526_vm6, %v1712_v12 }
 0xf8a   :  { %3770 = vmatpush3.bf16.msra.mxu0 %v1830_v14  ;;  %3771 = vmatprep.mubr.msk.bf16.mxu0 %vm4140_vm5, %v4139_v9  ;;  %v3336_v14 = vld [vmem:[%s5059_s27 + $0x3] ss:$0 sm:$0xff] }
 0xf8b   :  { %3766 = vmatmul.mubr.msk.bf16.vlgmr.msra.gmra.mrb[48].mxu1 %vm526_vm6, %v1713_v15  ;;  %3781 = vmatprep.subr.bf16.mxu0 %v4139_v9 }
 0xf8c   :  { %3776 = vmatpush3.bf16.msra.mxu1 %v1876_v16  ;;  %3777 = vmatprep.mubr.msk.bf16.mxu1 %vm4140_vm5, %v4139_v9 }
 0xf8d   :  { %3787 = vmatprep.subr.bf16.mxu1 %v4139_v9 }
0x105c   :  { %v1756_v17 = vpop.f32.mrb[40].mxu0 }
0x105d   :  { %v1757_v18 = vadd.f32 %v1756_v17, %v4464_v49  ;;  %v3761_v19 = vpop.f32.mrb[41].mxu0  ;;  %v3340_v17 = vld [vmem:[%s5010_s11 + $0x3] ss:$0 sm:$0xff] }
0x105e   :  { %v1759_v20 = vpop.f32.mrb[42].mxu0  ;;  %v1802_v21 = vpop.f32.mrb[48].mxu1 }
0x105f   :  { %v1808_v22 = vmul.f32 1.442695, %v1757_v18  ;;  %v1803_v24 = vadd.f32 %v1802_v21, %v4467_v50  ;;  %v3762_v25 = vpop.f32.mrb[43].mxu0  ;;  %v3767_v26 = vpop.f32.mrb[49].mxu1 }
0x1060   :  { %v1805_v27 = vpop.f32.mrb[50].mxu1 }
0x1061   :  { %4011 = vpow2.f32 %v1808_v22  ;;  %v1810_v28 = vmul.f32 1.442695, %v1803_v24  ;;  %v3768_v29 = vpop.f32.mrb[51].mxu1  ;;  %v3332_v22 = vld [vmem:[%s5060_s30 + $0x3] ss:$0 sm:$0xff] }
0x1063   :  { %4013 = vpow2.f32 %v1810_v28 }
0x106b   :  { %v4012_v30 = vpop.eup %4011 }
0x106c   :  { %v1812_v31 = vsel %vm623_vm7, %v4012_v30, 0.0 }
0x106d   :  { %v4014_v32 = vpop.eup %4013  ;;  %1813 = vadd.xlane.f32.xlu1 %v1812_v31 }
0x106e   :  { %v1815_v33 = vsel %vm623_vm7, %v4014_v32, 0.0 }
0x106f   :  { %1816 = vadd.xlane.f32.xlu0 %v1815_v33 }
0x10fa   :  { %v1814_v34 = vpop.xlane.xlu1 %1813 }
0x10fb   :  { %4015 = vrcp.f32 %v1814_v34 }
0x10fc   :  { %v1817_v35 = vpop.xlane.xlu0 %1816 }
0x10fd   :  { %4017 = vrcp.f32 %v1817_v35 }
0x1105   :  { %v4016_v36 = vpop.eup %4015 }
0x1106   :  { %v1820_v37 = vmul.f32 %v4016_v36, %v4012_v30 }
0x1107   :  { %v4018_v38 = vpop.eup %4017 }
0x1108   :  { %v1821_v45 = vmul.f32 %v4018_v38, %v4014_v32  ;;  %v1822_v48 = vpack.c.bf16 %v1820_v37, %v1820_v37 }
0x110a   :  { %3772 = vmatmul.mubr.msk.bf16.vlgmr.msra.gmra.mrb[44].mxu0 %vm623_vm7, %v1822_v48  ;;  %v1823_v51 = vpack.c.bf16 %v1821_v45, %v1821_v45 }
0x110b   :  { %3782 = vmatpush3.bf16.msra.mxu0 %v3925_v39  ;;  %3783 = vmatprep.mubr.msk.bf16.mxu0 %vm4140_vm5, %v4139_v9 }
0x110c   :  { %3778 = vmatmul.mubr.msk.bf16.vlgmr.msra.gmra.mrb[52].mxu1 %vm623_vm7, %v1823_v51  ;;  %3795 = vmatprep.subr.bf16.mxu0 %v4139_v9 }
0x110d   :  { %3788 = vmatpush3.bf16.msra.mxu1 %v3921_v2  ;;  %3791 = vmatprep.mubr.msk.bf16.mxu1 %vm4140_vm5, %v4139_v9 }
0x110e   :  { %3789 = vmatprep.subr.bf16.mxu1 %v4139_v9 }
0x1111   :  { %3790 = vmatpush3.bf16.msra.mxu1 %v3922_v52 }
0x1112   :  { %3803 = vmatprep.subr.bf16.mxu1 %v4139_v9 }
0x1114   :  { %3792 = vmatmul.mubr.msk.bf16.vlgmr.msra.gmra.mrb[56].mxu1 %vm242_vm4, %v4654_v46 }
0x1115   :  { %3804 = vmatpush3.bf16.msra.mxu1 %v3923_v53  ;;  %3807 = vmatprep.mubr.msk.bf16.mxu1 %vm4140_vm5, %v4139_v9 }
0x1116   :  { %3805 = vmatprep.subr.bf16.mxu1 %v4139_v9 }
0x1119   :  { %3806 = vmatpush3.bf16.msra.mxu1 %v3924_v54 }
0x111a   :  { %3817 = vmatprep.subr.bf16.mxu1 %v4139_v9 }
0x111c   :  { %3808 = vmatmul.mubr.msk.bf16.vlgmr.msra.gmra.mrb[60].mxu1 %vm242_vm4, %v4654_v46 }
0x111d   :  { %3819 = vmatprep.mubr.msk.bf16.mxu1 %vm4140_vm5, %v4139_v9 }
0x11dd   :  { %v1866_v23 = vpop.f32.mrb[44].mxu0 }
0x11de   :  { %v3773_v55 = vpop.f32.mrb[45].mxu0 }
0x11df   :  { %v1869_v56 = vpop.f32.mrb[46].mxu0  ;;  %v1912_v57 = vpop.f32.mrb[52].mxu1 }
0x11e0   :  { %v1918_v59 = vpack.c.bf16 %v1912_v57, %v1866_v23  ;;  %v3774_v60 = vpop.f32.mrb[47].mxu0  ;;  %v3779_v61 = vpop.f32.mrb[53].mxu1 }
0x11e1   :  { %v1915_v1 = vpop.f32.mrb[54].mxu1 }
0x11e2   :  { %v3780_v40 = vpop.f32.mrb[55].mxu1  ;;  %3784 = vmatmul.mubr.msk.bf16.vlgmr.msra.gmra.mrb[48].mxu0 %vm526_vm6, %v1918_v59 }
0x11e3   :  { %3796 = vmatpush3.bf16.msra.mxu0 %v3926_v58  ;;  %3799 = vmatprep.mubr.msk.bf16.mxu0 %vm4140_vm5, %v4139_v9  ;;  %v3928_v40 = vld [vmem:[%s5011_s12 + $0x18] sm:$0xff]  }
0x11e4   :  { %3797 = vmatprep.subr.bf16.mxu0 %v4139_v9 }
0x11e7   :  { %v2029_v4 = vpop.f32.mrb[56].mxu1  ;;  %3798 = vmatpush3.bf16.msra.mxu0 %v3927_v3 }
0x11e8   :  { %v3793_v42 = vpop.f32.mrb[57].mxu1  ;;  %3811 = vmatprep.subr.bf16.mxu0 %v4139_v9  ;;  %v2030_v27 = vadd.f32 %v3332_v22, %v2029_v4 }
0x11e9   :  { %v2032_v5 = vpop.f32.mrb[58].mxu1 }
0x11ea   :  { %v3794_v6 = vpop.f32.mrb[59].mxu1  ;;  %3800 = vmatmul.mubr.msk.bf16.vlgmr.msra.gmra.mrb[52].mxu0 %vm242_vm4, %v4654_v46  ;;  %v2033_v30 = vadd.f32 %v3332_v22, %v2032_v5  ;;  %v2154_v32 = vpack.c.bf16 %v2030_v27, %v2030_v27 }
0x11eb   :  { %3813 = vmatprep.mubr.msk.bf16.mxu0 %vm4140_vm5, %v4139_v9 }
0x11ec   :  { %v2155_v34 = vpack.c.bf16 %v2033_v30, %v2033_v30 }
0x11ef   :  { %v2147_v7 = vpop.f32.mrb[60].mxu1 }
0x11f0   :  { %v3809_v8 = vpop.f32.mrb[61].mxu1  ;;  %v2148_v24 = vadd.f32 %v3340_v17, %v2147_v7 }
0x11f1   :  { %v2150_v62 = vpop.f32.mrb[62].mxu1 }
0x11f2   :  { %v3810_v63 = vpop.f32.mrb[63].mxu1  ;;  %v2151_v28 = vadd.f32 %v3340_v17, %v2150_v62  ;;  %v2266_v31 = vpack.c.bf16 %v2148_v24, %v2148_v24 }
0x11f4   :  { %v2267_v33 = vpack.c.bf16 %v2151_v28, %v2151_v28  ;;  %v2272_v35 = vsel %vm158_vm0, %v2266_v31, 0 }
0x11f6   :  { %v2318_v36 = vsel %vm158_vm0, %v2267_v33, 0 }
0x12b5   :  { %v4749_v10 = vpop.f32.mrb[48].mxu0 }
0x12b6   :  { %v3785_v11 = vpop.f32.mrb[49].mxu0 }
0x12b7   :  { %v4751_v12 = vpop.f32.mrb[50].mxu0 }
0x12b8   :  { %v3786_v13 = vpop.f32.mrb[51].mxu0 }
0x12bd   :  { %v2088_v15 = vpop.f32.mrb[52].mxu0 }
0x12be   :  { %v2089_v16 = vadd.f32 %v3336_v14, %v2088_v15  ;;  %v3801_v46 = vpop.f32.mrb[53].mxu0  ;;  %v3331_v15 = vld [vmem:[%s5012_s13 + $0x1] ss:$0 sm:$0xff] }
0x12bf   :  { %v2091_v18 = vpop.f32.mrb[54].mxu0  ;;  %v1976_v17 = vadd.f32 %v3331_v15, %v4751_v12 }
0x12c0   :  { %v2156_v19 = vpack.c.bf16 %v2089_v16, %v2089_v16  ;;  %v2092_v20 = vadd.f32 %v3336_v14, %v2091_v18  ;;  %v3802_v21 = vpop.f32.mrb[55].mxu0  ;;  %v1975_v16 = vadd.f32 %v3331_v15, %v4749_v10 }
0x12c2   :  { %v2162_v25 = vsel %vm526_vm6, %v2156_v19, 0  ;;  %v2157_v26 = vpack.c.bf16 %v2092_v20, %v2092_v20 }
0x12c3   :  { %3812 = vmatpush3.bf16.xpose.msra.mxu0 %v2162_v25 }
0x12c4   :  { %v2208_v29 = vsel %vm526_vm6, %v2157_v26, 0  ;;  %3823 = vmatprep.subr.bf16.mxu0 %v4139_v9 }
0x12c5   :  { %3818 = vmatpush3.bf16.xpose.msra.mxu1 %v2208_v29 }
0x12c6   :  { %3829 = vmatprep.subr.bf16.mxu1 %v4139_v9 }
0x12ca   :  { %3814 = vmatmul.mubr.msk.bf16.vlgmr.msra.gmra.mrb[56].mxu0 %vm526_vm6, %v2154_v32 }
0x12cb   :  { %3824 = vmatpush3.bf16.msra.mxu0 %v2272_v35  ;;  %3825 = vmatprep.mubr.msk.bf16.mxu0 %vm4140_vm5, %v4139_v9  ;;  %v3930_v35 = vld [vmem:[%s5015_s16 + $0x18] sm:$0xff]  }
0x12cc   :  { %3820 = vmatmul.mubr.msk.bf16.vlgmr.msra.gmra.mrb[64].mxu1 %vm526_vm6, %v2155_v34  ;;  %3835 = vmatprep.subr.bf16.mxu0 %v4139_v9 }
0x12cd   :  { %3830 = vmatpush3.bf16.msra.mxu1 %v2318_v36  ;;  %3831 = vmatprep.mubr.msk.bf16.mxu1 %vm4140_vm5, %v4139_v9 }
0x12ce   :  { %3841 = vmatprep.subr.bf16.mxu1 %v4139_v9 }
0x139d   :  { %v2198_v37 = vpop.f32.mrb[56].mxu0 }
0x139e   :  { %v2199_v38 = vadd.f32 %v2198_v37, %v4464_v49  ;;  %v3815_v39 = vpop.f32.mrb[57].mxu0 }
0x139f   :  { %v2201_v45 = vpop.f32.mrb[58].mxu0  ;;  %v2244_v48 = vpop.f32.mrb[64].mxu1 }
0x13a0   :  { %v2250_v2 = vmul.f32 1.442695, %v2199_v38  ;;  %v2245_v51 = vadd.f32 %v2244_v48, %v4467_v50  ;;  %v3816_v52 = vpop.f32.mrb[59].mxu0  ;;  %v3821_v53 = vpop.f32.mrb[65].mxu1 }
0x13a1   :  { %v2247_v54 = vpop.f32.mrb[66].mxu1 }
0x13a2   :  { %4019 = vpow2.f32 %v2250_v2  ;;  %v2252_v23 = vmul.f32 1.442695, %v2245_v51  ;;  %v3822_v55 = vpop.f32.mrb[67].mxu1  ;;  %v3352_v51 = vld [vmem:[%s5013_s14 + $0x1] ss:$0 sm:$0xff] }
0x13a3   :  { %v3353_v55 = vld [vmem:[%s5014_s15 + $0x1] ss:$0 sm:$0xff] }
0x13a4   :  { %4021 = vpow2.f32 %v2252_v23 }
0x13ac   :  { %v4020_v56 = vpop.eup %4019 }
0x13ad   :  { %v2254_v57 = vsel %vm623_vm7, %v4020_v56, 0.0 }
0x13ae   :  { %v4022_v58 = vpop.eup %4021  ;;  %2255 = vadd.xlane.f32.xlu1 %v2254_v57 }
0x13af   :  { %v2257_v49 = vsel %vm623_vm7, %v4022_v58, 0.0 }
0x13b0   :  { %2258 = vadd.xlane.f32.xlu0 %v2257_v49 }
0x143b   :  { %v2256_v59 = vpop.xlane.xlu1 %2255 }
0x143c   :  { %4023 = vrcp.f32 %v2256_v59  ;;  %v3931_v59 = vld [vmem:[%s5017_s18 + $0x20] sm:$0xff]  }
0x143d   :  { %v2259_v60 = vpop.xlane.xlu0 %2258 }
0x143e   :  { %4025 = vrcp.f32 %v2259_v60  ;;  %v3932_v60 = vld [vmem:[%s5017_s18 + $0x28] sm:$0xff]  }
0x1446   :  { %v4024_v50 = vpop.eup %4023 }
0x1447   :  { %v2262_v61 = vmul.f32 %v4024_v50, %v4020_v56  ;;  %v3933_v50 = vld [vmem:[%s5017_s18 + $0x30] sm:$0xff]  }
0x1448   :  { %v4026_v1 = vpop.eup %4025 }
0x1449   :  { %v2263_v3 = vmul.f32 %v4026_v1, %v4022_v58  ;;  %v2264_v4 = vpack.c.bf16 %v2262_v61, %v2262_v61  ;;  %v3934_v61 = vld [vmem:[%s5017_s18 + $0x38] sm:$0xff]   ;;  %v3359_v1 = vld [vmem:[%s5016_s17 + $0x1] ss:$0 sm:$0xff] }
0x144b   :  { %3826 = vmatmul.mubr.msk.bf16.vlgmr.msra.gmra.mrb[60].mxu0 %vm623_vm7, %v2264_v4  ;;  %v2265_v42 = vpack.c.bf16 %v2263_v3, %v2263_v3 }
0x144c   :  { %3836 = vmatpush3.bf16.msra.mxu0 %v3928_v40  ;;  %3837 = vmatprep.mubr.msk.bf16.mxu0 %vm4140_vm5, %v4139_v9 }
0x144d   :  { %3832 = vmatmul.mubr.msk.bf16.vlgmr.msra.gmra.mrb[68].mxu1 %vm623_vm7, %v2265_v42  ;;  %3849 = vmatprep.subr.bf16.mxu0 %v4139_v9 }
0x144e   :  { %3845 = vmatprep.mubr.msk.bf16.mxu1 %vm4140_vm5, %v4139_v9 }
0x151e   :  { %v2308_v5 = vpop.f32.mrb[60].mxu0 }
0x151f   :  { %v3827_v6 = vpop.f32.mrb[61].mxu0 }
0x1520   :  { %v2311_v7 = vpop.f32.mrb[62].mxu0  ;;  %v2354_v8 = vpop.f32.mrb[68].mxu1 }
0x1521   :  { %v2360_v62 = vpack.c.bf16 %v2354_v8, %v2308_v5  ;;  %v3828_v63 = vpop.f32.mrb[63].mxu0  ;;  %v3833_v11 = vpop.f32.mrb[69].mxu1 }
0x1522   :  { %v2357_v13 = vpop.f32.mrb[70].mxu1 }
0x1523   :  { %v3834_v14 = vpop.f32.mrb[71].mxu1  ;;  %3838 = vmatmul.mubr.msk.bf16.vlgmr.msra.gmra.mrb[64].mxu0 %vm526_vm6, %v2360_v62 }
0x1524   :  { %3857 = vmatprep.mubr.msk.bf16.mxu0 %vm4140_vm5, %v4139_v9  ;;  %3850 = vmatpush3.bf16.msra.mxu0 %v3931_v59  ;;  %v3953_v59 = vld [vmem:[%s5023_s24 + $0x10] sm:$0xff]  }
0x1525   :  { %3851 = vmatprep.subr.bf16.mxu0 %v4139_v9 }
0x1528   :  { %3852 = vmatpush3.bf16.msra.mxu0 %v3932_v60  ;;  %v3955_v60 = vld [vmem:[%s5023_s24 + $0x58] sm:$0xff]  }
0x1529   :  { %3853 = vmatprep.subr.bf16.mxu0 %v4139_v9 }
0x152c   :  { %3854 = vmatpush3.bf16.msra.mxu0 %v3933_v50  ;;  %v3957_v50 = vld [vmem:[%s5023_s24 + $0x18] sm:$0xff]  }
0x152d   :  { %3855 = vmatprep.subr.bf16.mxu0 %v4139_v9 }
0x1530   :  { %3856 = vmatpush3.bf16.msra.mxu0 %v3934_v61  ;;  %v3959_v61 = vld [vmem:[%s5023_s24 + $0x60] sm:$0xff]  }
0x15f6   :  { %v2404_v46 = vpop.f32.mrb[64].mxu0 }
0x15f7   :  { %v2411_v18 = vadd.f32 %v2404_v46, %v1975_v16  ;;  %v3839_v19 = vpop.f32.mrb[65].mxu0 }
0x15f8   :  { %v2407_v20 = vpop.f32.mrb[66].mxu0 }
0x15f9   :  { %v2412_v21 = vadd.f32 %v2407_v20, %v1976_v17  ;;  %v3840_v22 = vpop.f32.mrb[67].mxu0  ;;  %v2413_v24 = vadd.f32 %v2411_v18, %v4645_v41 }
0x15fb   :  { %v2419_v25 = vsel %vm242_vm4, %v2413_v24, 0.0  ;;  %v2414_v26 = vadd.f32 %v2412_v21, %v4647_v44  ;;  %v3929_v44 = vld [vmem:[%s5015_s16 + $0x10] sm:$0xff]   ;;  %s4105_s16 = scalar_lea.vmem %s3208_s6, 256 }
0x15fc   :  { %2420 = vadd.xlane.f32.xlu1 %v2419_v25  ;;  %3842 = vmatpush3.bf16.msra.mxu1 %v3929_v44  ;;  %p4106_p10 = scmp.ne.s32.totalorder %s3208_s6, %s4105_s16  ;;  %p4111_p12 = scmp.lt.s32.totalorder %s4105_s16, %s4105_s16 }
0x15fd   :  { %v2422_v27 = vsel %vm242_vm4, %v2414_v26, 0.0  ;;  %3843 = vmatprep.subr.bf16.mxu1 %v4139_v9 }
0x15fe   :  { %2423 = vadd.xlane.f32.xlu0 %v2422_v27  ;;  %p4112_p13 = por %p4111_p12, %p4110_p11 }
0x1600   :  { %3844 = vmatpush3.bf16.msra.mxu1 %v3930_v35  ;;  %p4113_p0 = pnand %p4112_p13, %p4106_p10 }
0x1689   :  { %v2421_v28 = vpop.xlane.xlu1 %2420 }
0x168a   :  { %v2425_v10 = vmul.f32 0.03125, %v2421_v28 }
0x168b   :  { %v2424_v29 = vpop.xlane.xlu0 %2423 }
0x168c   :  { %v2427_v30 = vsub.f32 %v2413_v24, %v2425_v10  ;;  %v2426_v12 = vmul.f32 0.03125, %v2424_v29 }
0x168e   :  { %v2428_v31 = vsub.f32 %v2414_v26, %v2426_v12  ;;  %v2429_v32 = vmul.f32 %v2427_v30, %v2427_v30  ;;  %v3372_v26 = vld [vmem:[%s5018_s19 + $0x1] ss:$0 sm:$0xff] }
0x1690   :  { %v2431_v33 = vsel %vm242_vm4, %v2429_v32, 0.0  ;;  %v2430_v34 = vmul.f32 %v2428_v31, %v2428_v31 }
0x1691   :  { %2432 = vadd.xlane.f32.xlu1 %v2431_v33 }
0x1692   :  { %v2434_v41 = vsel %vm242_vm4, %v2430_v34, 0.0 }
0x1693   :  { %2435 = vadd.xlane.f32.xlu0 %v2434_v41 }
0x171e   :  { %v2433_v36 = vpop.xlane.xlu1 %2432 }
0x171f   :  { %v2437_v37 = vmul.f32 0.03125, %v2433_v36 }
0x1720   :  { %v2436_v38 = vpop.xlane.xlu0 %2435 }
0x1721   :  { %v2439_v39 = vadd.f32 1e-07, %v2437_v37  ;;  %v2438_v45 = vmul.f32 0.03125, %v2436_v38 }
0x1723   :  { %4027 = vrsqrt.f32 %v2439_v39  ;;  %v2440_v48 = vadd.f32 1e-07, %v2438_v45 }
0x1725   :  { %4029 = vrsqrt.f32 %v2440_v48 }
0x172d   :  { %v4028_v2 = vpop.eup %4027 }
0x172e   :  { %v2443_v52 = vmul.f32 %v4028_v2, %v2427_v30 }
0x172f   :  { %v4030_v53 = vpop.eup %4029 }
0x1730   :  { %v2451_v54 = vmul.f32 %v3352_v51, %v2443_v52  ;;  %v2444_v23 = vmul.f32 %v4030_v53, %v2428_v31  ;;  %v3935_v52 = vld [vmem:[%s5021_s22] ss:$16 sps:$4 sm:$0xff]  }
0x1731   :  { %v3938_v53 = vld [vmem:[%s5021_s22 + $0x20] ss:$16 sps:$4 sm:$0xff]  }
0x1732   :  { %v2452_v56 = vmul.f32 %v3352_v51, %v2444_v23  ;;  %v2459_v57 = vadd.f32 %v3353_v55, %v2451_v54  ;;  %v3937_v51 = vld [vmem:[%s5021_s22 + $0x4] ss:$16 sps:$4 sm:$0xff]   ;;  %v3943_v23 = vld [vmem:[%s5021_s22 + $0xc] ss:$16 sps:$4 sm:$0xff]  }
0x1733   :  { %2757 = vmatprep.subr.bf16.mxu1 %v3937_v51  ;;  %v3940_v54 = vld [vmem:[%s5021_s22 + $0x24] ss:$16 sps:$4 sm:$0xff]  }
0x1734   :  { %v2460_v58 = vadd.f32 %v3353_v55, %v2452_v56  ;;  %v3947_v55 = vld [vmem:[%s5023_s24 + $0x40] sm:$0xff]  }
0x1735   :  { %v3948_v56 = vld [vmem:[%s5023_s24] sm:$0xff]   ;;  %3532 = vmatprep.subr.bf16.mxu0 %v3947_v55  ;;  %v2708_v55 = vsub.s32 3, %v4458_v43 }
0x1736   :  { %v2461_v49 = vpack.c.bf16 %v2460_v58, %v2459_v57 }
0x1738   :  { %3846 = vmatmul.mubr.msk.bf16.vlgmr.msra.gmra.mrb[72].mxu1 %vm242_vm4, %v2461_v49  ;;  %v3951_v49 = vld [vmem:[%s5023_s24 + $0x50] sm:$0xff]  }
0x1739   :  { %2789 = vmatprep.mubr.bf16.mxu1 %v4138_v0  ;;  %2758 = vmatpush1.bf16.msra.mxu1 %v3935_v52 }
0x173a   :  { %2759 = vmatprep.subr.bf16.mxu1 %v3940_v54 }
0x173d   :  { %2760 = vmatpush1.bf16.msra.mxu1 %v3938_v53  ;;  %v2704_v53 = vsub.s32 2, %v4458_v43 }
0x173e   :  { %2800 = vmatprep.subr.bf16.mxu1 %v3943_v23 }
0x180b   :  { %v2524_v40 = vpop.f32.mrb[72].mxu1 }
0x180c   :  { %v2525_v3 = vadd.f32 %v3359_v1, %v2524_v40  ;;  %v3847_v4 = vpop.f32.mrb[73].mxu1  ;;  %v3963_v40 = vld [vmem:[%s5023_s24 + $0x68] sm:$0xff]  }
0x180d   :  { %v2527_v42 = vpop.f32.mrb[74].mxu1 }
0x180e   :  { %v2531_v5 = vmul.f32 %v2525_v3, %v2525_v3  ;;  %v2528_v6 = vadd.f32 %v3359_v1, %v2527_v42  ;;  %v3848_v7 = vpop.f32.mrb[75].mxu1  ;;  %v3961_v1 = vld [vmem:[%s5023_s24 + $0x20] sm:$0xff]  }
0x1810   :  { %v2533_v8 = vmul.f32 %v2531_v5, %v2525_v3  ;;  %v2532_v62 = vmul.f32 %v2528_v6, %v2528_v6 }
0x1812   :  { %v2535_v63 = vmul.f32 0.044715, %v2533_v8  ;;  %v2534_v9 = vmul.f32 %v2532_v62, %v2528_v6  ;;  %v3380_v62 = vld [vmem:[%s5019_s20 + $0x1] ss:$0 sm:$0xff] }
0x1814   :  { %v2537_v11 = vadd.f32 %v2535_v63, %v2525_v3  ;;  %v2536_v13 = vmul.f32 0.044715, %v2534_v9 }
0x1816   :  { %v2539_v14 = vmul.f32 0.7978846, %v2537_v11  ;;  %v2538_v15 = vadd.f32 %v2536_v13, %v2528_v6 }
0x1818   :  { %4031 = vtanh.f32 %v2539_v14  ;;  %v2540_v16 = vmul.f32 0.7978846, %v2538_v15  ;;  %v3381_v14 = vld [vmem:[%s5020_s21 + $0x1] ss:$0 sm:$0xff] }
0x181a   :  { %4033 = vtanh.f32 %v2540_v16 }
0x1822   :  { %v4032_v46 = vpop.eup %4031 }
0x1823   :  { %v2543_v17 = vadd.f32 1.0, %v4032_v46 }
0x1824   :  { %v4034_v18 = vpop.eup %4033 }
0x1825   :  { %v2545_v19 = vmul.f32 0.5, %v2543_v17  ;;  %v2544_v20 = vadd.f32 1.0, %v4034_v18  ;;  %v3941_v17 = vld [vmem:[%s5021_s22 + $0x8] ss:$16 sps:$4 sm:$0xff]  }
0x1827   :  { %v2546_v21 = vmul.f32 0.5, %v2544_v20  ;;  %v2547_v22 = vmul.f32 %v2545_v19, %v2525_v3  ;;  %v3946_v19 = vld [vmem:[%s5021_s22 + $0x2c] ss:$16 sps:$4 sm:$0xff]   ;;  %v3944_v20 = vld [vmem:[%s5021_s22 + $0x28] ss:$16 sps:$4 sm:$0xff]  }
0x1829   :  { %v2548_v24 = vmul.f32 %v2546_v21, %v2528_v6  ;;  %v3952_v21 = vld [vmem:[%s5023_s24 + $0xc0] sm:$0xff]  }
0x182b   :  { %v2549_v25 = vpack.c.bf16 %v2548_v24, %v2547_v22  ;;  %v3954_v22 = vld [vmem:[%s5023_s24 + $0x80] sm:$0xff]   ;;  %v3956_v24 = vld [vmem:[%s5023_s24 + $0xc8] sm:$0xff]  }
0x182d   :  { %3858 = vmatmul.mubr.msk.bf16.vlgmr.msra.gmra.mrb[68].mxu0 %vm1397_vm8, %v2549_v25  ;;  %v3960_v25 = vld [vmem:[%s5023_s24 + $0xd0] sm:$0xff]  }
0x182e   :  { %3533 = vmatpush3.bf16.msra.mxu0 %v3948_v56 }
0x1900   :  { %v2628_v27 = vpop.f32.mrb[68].mxu0 }
0x1901   :  { %v2629_v28 = vadd.f32 %v3372_v26, %v2628_v27  ;;  %v3859_v10 = vpop.f32.mrb[69].mxu0  ;;  %v3964_v27 = vld [vmem:[%s5023_s24 + $0xd8] sm:$0xff]  }
0x1902   :  { %v2631_v29 = vpop.f32.mrb[70].mxu0  ;;  %v3966_v10 = vld [vmem:[%s5023_s24 + $0x98] sm:$0xff]  }
0x1903   :  { %v2632_v30 = vadd.f32 %v3372_v26, %v2631_v29  ;;  %v3860_v12 = vpop.f32.mrb[71].mxu0  ;;  %v2635_v31 = vadd.f32 %v2629_v28, %v2459_v57  ;;  %v3949_v57 = vld [vmem:[%s5023_s24 + $0x48] sm:$0xff]   ;;  %v3962_v26 = vld [vmem:[%s5023_s24 + $0x90] sm:$0xff]  }
0x1904   :  { %3534 = vmatprep.subr.bf16.mxu0 %v3949_v57  ;;  %v3965_v28 = vld [vmem:[%s5023_s24 + $0x28] sm:$0xff]   ;;  %v3967_v29 = vld [vmem:[%s5023_s24 + $0x70] sm:$0xff]  }
0x1905   :  { %v2641_v32 = vsel %vm242_vm4, %v2635_v31, 0.0  ;;  %v2636_v33 = vadd.f32 %v2632_v30, %v2460_v58  ;;  %v3950_v58 = vld [vmem:[%s5023_s24 + $0x8] sm:$0xff]   ;;  %v3968_v30 = vld [vmem:[%s5023_s24 + $0xe0] sm:$0xff]   ;;  %v3969_v12 = vld [vmem:[%s5023_s24 + $0x30] sm:$0xff]  }
0x1906   :  { %2642 = vadd.xlane.f32.xlu1 %v2641_v32  ;;  %3535 = vmatpush3.bf16.msra.mxu0 %v3950_v58  ;;  %v3971_v32 = vld [vmem:[%s5023_s24 + $0x78] sm:$0xff]  }
0x1907   :  { %v2644_v34 = vsel %vm242_vm4, %v2636_v33, 0.0  ;;  %3536 = vmatprep.subr.bf16.mxu0 %v3951_v49 }
0x1908   :  { %2645 = vadd.xlane.f32.xlu0 %v2644_v34  ;;  %v3973_v34 = vld [vmem:[%s5023_s24 + $0x38] sm:$0xff]  }
0x190a   :  { %3537 = vmatpush3.bf16.msra.mxu0 %v3953_v59 }
0x190b   :  { %3538 = vmatprep.subr.bf16.mxu0 %v3955_v60 }
0x190e   :  { %3539 = vmatpush3.bf16.msra.mxu0 %v3957_v50 }
0x190f   :  { %3540 = vmatprep.subr.bf16.mxu0 %v3959_v61 }
0x1912   :  { %3541 = vmatpush3.bf16.msra.mxu0 %v3961_v1 }
0x1913   :  { %3542 = vmatprep.subr.bf16.mxu0 %v3963_v40 }
0x1916   :  { %3543 = vmatpush3.bf16.msra.mxu0 %v3965_v28 }
0x1917   :  { %3544 = vmatprep.subr.bf16.mxu0 %v3967_v29 }
0x191a   :  { %3545 = vmatpush3.bf16.msra.mxu0 %v3969_v12 }
0x191b   :  { %3546 = vmatprep.subr.bf16.mxu0 %v3971_v32 }
0x191e   :  { %3547 = vmatpush3.bf16.msra.mxu0 %v3973_v34 }
0x1993   :  { %v2643_v41 = vpop.xlane.xlu1 %2642 }
0x1994   :  { %v2647_v44 = vmul.f32 0.03125, %v2643_v41  ;;  %v3974_v41 = vld [vmem:[%s5023_s24 + $0xa8] sm:$0xff]  }
0x1995   :  { %v2646_v35 = vpop.xlane.xlu0 %2645 }
0x1996   :  { %v2649_v36 = vsub.f32 %v2635_v31, %v2647_v44  ;;  %v2648_v37 = vmul.f32 0.03125, %v2646_v35  ;;  %v3970_v31 = vld [vmem:[%s5023_s24 + $0xa0] sm:$0xff]   ;;  %v3975_v44 = vld [vmem:[%s5023_s24 + $0xf0] sm:$0xff]  }
0x1997   :  { %v3976_v35 = vld [vmem:[%s5023_s24 + $0xb0] sm:$0xff]  }
0x1998   :  { %v2650_v38 = vsub.f32 %v2636_v33, %v2648_v37  ;;  %v2651_v39 = vmul.f32 %v2649_v36, %v2649_v36  ;;  %v3972_v33 = vld [vmem:[%s5023_s24 + $0xe8] sm:$0xff]   ;;  %v3978_v37 = vld [vmem:[%s5023_s24 + $0xb8] sm:$0xff]  }
0x199a   :  { %v2653_v45 = vsel %vm242_vm4, %v2651_v39, 0.0  ;;  %v2652_v48 = vmul.f32 %v2650_v38, %v2650_v38  ;;  %v2700_v39 = vsub.s32 1, %v4458_v43 }
0x199b   :  { %2654 = vadd.xlane.f32.xlu1 %v2653_v45 }
0x199c   :  { %v2656_v2 = vsel %vm242_vm4, %v2652_v48, 0.0 }
0x199d   :  { %2657 = vadd.xlane.f32.xlu0 %v2656_v2 }
0x1a28   :  { %v2655_v3 = vpop.xlane.xlu1 %2654 }
0x1a29   :  { %v2659_v4 = vmul.f32 0.03125, %v2655_v3 }
0x1a2a   :  { %v2658_v42 = vpop.xlane.xlu0 %2657 }
0x1a2b   :  { %v2661_v5 = vadd.f32 1e-07, %v2659_v4  ;;  %v2660_v6 = vmul.f32 0.03125, %v2658_v42 }
0x1a2d   :  { %4035 = vrsqrt.f32 %v2661_v5  ;;  %v2662_v7 = vadd.f32 1e-07, %v2660_v6 }
0x1a2f   :  { %4037 = vrsqrt.f32 %v2662_v7 }
0x1a37   :  { %v4036_v8 = vpop.eup %4035 }
0x1a38   :  { %v2665_v63 = vmul.f32 %v4036_v8, %v2649_v36  ;;  %v3977_v36 = vld [vmem:[%s5023_s24 + $0xf8] sm:$0xff]  }
0x1a39   :  { %v4038_v9 = vpop.eup %4037 }
0x1a3a   :  { %v2673_v11 = vmul.f32 %v3380_v62, %v2665_v63  ;;  %v2666_v13 = vmul.f32 %v4038_v9, %v2650_v38  ;;  %v2692_v38 = vld [vmem:[%s5022_s23] sm:$0xf] }
0x1a3b   :  { %v2697_v45 = vrot.slane %v2692_v38, %v4461_v47  ;;  %v2701_v48 = vrot.slane %v2692_v38, %v2700_v39  ;;  %v2705_v60 = vrot.slane %v2692_v38, %v2704_v53  ;;  %v2709_v1 = vrot.slane %v2692_v38, %v2708_v55 }
0x1a3c   :  { %v2674_v15 = vmul.f32 %v3380_v62, %v2666_v13  ;;  %v2681_v16 = vadd.f32 %v3381_v14, %v2673_v11 }
0x1a3e   :  { %v2682_v46 = vadd.f32 %v3381_v14, %v2674_v15 }
0x1a40   :  { %v2683_v18 = vpack.c.bf16 %v2682_v46, %v2681_v16 }
0x1a42   :  { %3390 = vmatmul.mubr.msk.bf16.vlgmr.msra.gmra.mrb[76].mxu1 %vm242_vm4, %v2683_v18 }
0x1a43   :  { %2801 = vmatpush1.bf16.msra.mxu1 %v3941_v17  ;;  %2832 = vmatprep.mubr.bf16.mxu1 %v4138_v0  ;;  %v3958_v0 = vld [vmem:[%s5023_s24 + $0x88] sm:$0xff]  }
0x1a44   :  { %2802 = vmatprep.subr.bf16.mxu1 %v3946_v19 }
0x1a47   :  { %2803 = vmatpush1.bf16.msra.mxu1 %v3944_v20  ;;  %v3392_v20 = vld [vmem:[%s5062_s0] ss:$0 sm:$0xff] }
0x1a48   :  { %3554 = vmatprep.subr.bf16.mxu1 %v3952_v21 }
0x1a4a   :  { %3391 = vmatmul.mubr.msk.bf16.vlgmr.msra.gmra.mrb[80].mxu1 %vm242_vm4, %v2683_v18 }
0x1a4b   :  { %3555 = vmatpush3.bf16.msra.mxu1 %v3954_v22 }
0x1a4c   :  { %3556 = vmatprep.subr.bf16.mxu1 %v3956_v24 }
0x1a4f   :  { %3557 = vmatpush3.bf16.msra.mxu1 %v3958_v0 }
0x1a50   :  { %3558 = vmatprep.subr.bf16.mxu1 %v3960_v25 }
0x1a53   :  { %3559 = vmatpush3.bf16.msra.mxu1 %v3962_v26 }
0x1a54   :  { %3560 = vmatprep.subr.bf16.mxu1 %v3964_v27 }
0x1a57   :  { %3561 = vmatpush3.bf16.msra.mxu1 %v3966_v10 }
0x1a58   :  { %3562 = vmatprep.subr.bf16.mxu1 %v3968_v30 }
0x1a5b   :  { %3563 = vmatpush3.bf16.msra.mxu1 %v3970_v31 }
0x1a5c   :  { %3564 = vmatprep.subr.bf16.mxu1 %v3972_v33 }
0x1a5f   :  { %3565 = vmatpush3.bf16.msra.mxu1 %v3974_v41 }
0x1a60   :  { %3566 = vmatprep.subr.bf16.mxu1 %v3975_v44 }
0x1a63   :  { %3567 = vmatpush3.bf16.msra.mxu1 %v3976_v35 }
0x1a64   :  { %3568 = vmatprep.subr.bf16.mxu1 %v3977_v36 }
0x1a67   :  { %3569 = vmatpush3.bf16.msra.mxu1 %v3978_v37 }
0x1b15   :  { %v2791_v2 = vpop.f32.mrb[76].mxu1 }
0x1b16   :  { %v2792_v51 = vadd.f32 %v2791_v2, %v2697_v45  ;;  %v2793_v52 = vpop.f32.mrb[77].mxu1 }
0x1b17   :  { %v2794_v54 = vadd.f32 %v2793_v52, %v2701_v48  ;;  %v2795_v23 = vpop.f32.mrb[78].mxu1 }
0x1b18   :  { %v2796_v56 = vadd.f32 %v2795_v23, %v2697_v45  ;;  %v2797_v57 = vpop.f32.mrb[79].mxu1  ;;  %v2843_v49 = vmax.f32 %v2792_v51, 0.0 }
0x1b19   :  { %v2798_v58 = vadd.f32 %v2797_v57, %v2701_v48  ;;  %v2844_v50 = vmax.f32 %v2794_v54, 0.0 }
0x1b1a   :  { %v2847_v59 = vmax.f32 %v2796_v56, 0.0 }
0x1b1b   :  { %v2848_v61 = vmax.f32 %v2798_v58, 0.0 }
0x1b1c   :  { %v2851_v47 = vpack.c.bf16 %v2847_v59, %v2843_v49 }
0x1b1d   :  { %v2852_v40 = vpack.c.bf16 %v2848_v61, %v2844_v50  ;;  %v2834_v3 = vpop.f32.mrb[80].mxu1 }
0x1b1e   :  { %v2835_v4 = vadd.f32 %v2834_v3, %v2705_v60  ;;  %v2836_v42 = vpop.f32.mrb[81].mxu1 }
0x1b1f   :  { %v2837_v5 = vadd.f32 %v2836_v42, %v2709_v1  ;;  %v2838_v6 = vpop.f32.mrb[82].mxu1  ;;  %3150 = vmatprep.mubr.bf16.mxu0 %v2852_v40 }
0x1b20   :  { %v2839_v7 = vadd.f32 %v2838_v6, %v2705_v60  ;;  %v2840_v8 = vpop.f32.mrb[83].mxu1  ;;  %3151 = vmatmul.mubr.bf16.vlgmr.msra.gmra.mrb[72].mxu0 %v2851_v47  ;;  %v2845_v62 = vmax.f32 %v2835_v4, 0.0 }
0x1b21   :  { %v2841_v43 = vadd.f32 %v2840_v8, %v2709_v1  ;;  %v2846_v9 = vmax.f32 %v2837_v5, 0.0 }
0x1b22   :  { %v2849_v63 = vmax.f32 %v2839_v7, 0.0 }
0x1b23   :  { %v2850_v11 = vmax.f32 %v2841_v43, 0.0 }
0x1b24   :  { %v2853_v13 = vpack.c.bf16 %v2849_v63, %v2845_v62 }
0x1b25   :  { %v2854_v14 = vpack.c.bf16 %v2850_v11, %v2846_v9 }
0x1b27   :  { %3191 = vmatprep.mubr.bf16.mxu1 %v2854_v14 }
0x1b28   :  { %3192 = vmatmul.mubr.bf16.vlgmr.msra.gmra.mrb[84].mxu1 %v2853_v13 }
0x1bf3   :  { %v3548_v15 = vpop.f32.mrb[72].mxu0 }
0x1bf4   :  { %v3549_v16 = vpop.f32.mrb[73].mxu0 }
0x1bf5   :  { %v3550_v46 = vadd.f32 %v3549_v16, %v3548_v15  ;;  %v3551_v17 = vpop.f32.mrb[74].mxu0 }
0x1bf6   :  { %v3552_v18 = vpop.f32.mrb[75].mxu0 }
0x1bf7   :  { %v3553_v19 = vadd.f32 %v3552_v18, %v3551_v17  ;;  %v3153_v24 = vadd.f32 %v3550_v46, %v3392_v20 }
0x1bf9   :  { %v3156_v27 = vadd.f32 %v3553_v19, %v3392_v20 }
0x1bfb   :  { %v3570_v21 = vpop.f32.mrb[84].mxu1 }
0x1bfc   :  { %v3571_v22 = vpop.f32.mrb[85].mxu1 }
0x1bfd   :  { %v3572_v0 = vadd.f32 %v3571_v22, %v3570_v21  ;;  %v3573_v25 = vpop.f32.mrb[86].mxu1 }
0x1bfe   :  { %v3574_v26 = vpop.f32.mrb[87].mxu1 }
0x1bff   :  { %v3194_v28 = vadd.f32 %v3572_v0, %v3153_v24  ;;  %v3575_v10 = vadd.f32 %v3574_v26, %v3573_v25 }
0x1c01   :  { %3200 = vst [vmem:[#allocation8] sm:$0xff] %v3194_v28  ;;  %v3197_v29 = vadd.f32 %v3575_v10, %v3156_v27 }
0x1c03   :  { %3201 = vst [vmem:[#allocation8 + $0x8] sm:$0xff] %v3197_v29 }
0x1c04   :  { %4116 = shalt.err (!%p4113_p0)
}
0x1c05   :  { %s5063_s14 = sld [smem:[#allocation24_spill]] }
0x1c0b   :  { %s4117_s8 = scalar_lea.hbm %s5063_s14, 256 }
0x1c0c   :  { %p4118_p1 = scmp.ne.s32.totalorder %s5063_s14, %s4117_s8  ;;  %p4121_p2 = scmp.lt.u32.totalorder %s4117_s8, %s5063_s14 }
0x1c0e   :  { %p4123_p3 = pnand %p4121_p2, %p4118_p1 }
0x1c10   :  { %4126 = shalt.err (!%p4123_p3)
}
0x1c11   :  { %3213 = dma.vmem_to_hbm [thread:$0]  %s3208_s6, 256, %s5063_s14, [#allocation4], %s4135_s3, %s4135_s3, %s4136_s29  }
0x1c12   :  { %4131 = dma.done.wait [#allocation4], 256  }
0x1c13   :  { %4132 = vsyncadd [#allocation4], 4294967040 }
0x1c14   :  { %3217 = vsyncpa [#allocation3], 1 }
0x1c15   :  { %3218 = vsyncpa [#allocation6], 1 }
0x1c16   :  { %3219 = vsyncpa [#allocation4], 1 }

</bundles_post_ra>
